<compile_context>
chip_gen: v5e
topology: v5e:2x2
jax: 0.10.0
libtpu: 0.0.40
codegen_flags: <defaults>
</compile_context>

<pallas_src>
import functools

import jax
import jax.numpy as jnp
from jax.experimental import pallas as pl
from jax.experimental.pallas import tpu as pltpu


# --------------------------------------------------------------------------------------
# helpers
# --------------------------------------------------------------------------------------
_VMEM_LIMIT = 48 * 1024 * 1024          # <= v7x physical 64 MiB; fine on v5e/v6e
_VMEM_TILE_BUDGET = 32 * 1024 * 1024    # what the m-tile picker budgets tiles against


def _round_up(a, b):
    return (a + b - 1) // b * b


def _k_tiling(K):
    """Return (K_pad, tk).  Single 16-aligned tile when K <= 512 (bf16 sublane packing),
    otherwise 128-multiple K tiles chosen to minimize zero padding."""
    if K <= 512:
        kp = _round_up(K, 16)
        return kp, kp
    best = None
    for tk in (512, 384, 256):
        kp = _round_up(K, tk)
        if best is None or kp < best[0]:
            best = (kp, tk)
    return best


def _pick_m_tile(M_pad, K_pad, tk, tc):
    """Largest 128-multiple m tile that (a) divides M_pad, (b) keeps >= 2 parallel
    m blocks when possible (dual-TC v7x), (c) fits the VMEM tile budget."""
    for tm in (2048, 1536, 1024, 768, 512, 384, 256, 128):
        if M_pad % tm:
            continue
        if M_pad // tm < 2 and M_pad > 128:
            continue
        need = (2 * tk * tm * 2          # patch tile, double-buffered, bf16
                + 2 * tc * tm * 2        # output tile, double-buffered, bf16
                + 2 * tc * tm * 2        # residual tile (worst case), bf16
                + tc * tm * 4            # f32 accumulator scratch
                + 2 * tc * K_pad * 2)    # resident weight
        if need <= _VMEM_TILE_BUDGET:
            return tm
    return 128


def _sigmoid_exact(x):
    # Exact sigmoid (review correctness concern: avoid approx reciprocal drift).
    return 1.0 / (1.0 + jnp.exp(-x))


# --------------------------------------------------------------------------------------
# Pallas kernels
# --------------------------------------------------------------------------------------
def _conv_mm_kernel(*refs, act, fuse_res, tk, nk):
    """(Cout_tile, K) x (K, tm) -> (Cout_tile, tm), f32 accumulator over the K grid axis.

    Weight block is VMEM-resident (constant index_map); optional fused input SiLU (act)
    and fused residual add (fuse_res) in prologue / epilogue.  Output stored in bf16.
    """
    if fuse_res:
        w_ref, p_ref, b_ref, r_ref, o_ref, acc_ref = refs
    else:
        w_ref, p_ref, b_ref, o_ref, acc_ref = refs
        r_ref = None

    k = pl.program_id(2)

    @pl.when(k == 0)
    def _():
        acc_ref[...] = jnp.zeros_like(acc_ref)

    if nk == 1:
        w = w_ref[...]
    else:
        start = pl.multiple_of(k * tk, tk)      # tk is a multiple of 128 in this branch
        w = w_ref[:, pl.ds(start, tk)]

    p = p_ref[...]
    if act:
        pf = p.astype(jnp.float32)
        p = (pf * _sigmoid_exact(pf)).astype(p_ref.dtype)   # SiLU fused on conv input

    acc_ref[...] += jnp.dot(w, p, preferred_element_type=jnp.float32)

    @pl.when(k == nk - 1)
    def _():
        y = acc_ref[...] + b_ref[...]                        # (tc, tm) + (tc, 1), f32
        if fuse_res:
            y = y + r_ref[...].astype(jnp.float32)           # residual add in f32
        o_ref[...] = y.astype(o_ref.dtype)                   # store bf16


def _gn_silu_kernel(x_ref, g_ref, b_ref, o_ref, *, eps):
    # x block: (1, cpg, N, HW); gamma/beta block: (1, cpg, 1, 1).
    # Per-image statistics over (channel-in-group, spatial); two-pass variance in f32.
    x = x_ref[0].astype(jnp.float32)                  # (cpg, N, HW)
    m1 = jnp.mean(x, axis=2, keepdims=True)           # (cpg, N, 1)
    mean = jnp.mean(m1, axis=0, keepdims=True)        # (1, N, 1)
    d = x - mean
    v1 = jnp.mean(d * d, axis=2, keepdims=True)
    var = jnp.mean(v1, axis=0, keepdims=True)
    inv = jax.lax.rsqrt(var + eps)
    y = d * inv * g_ref[0] + b_ref[0]
    o_ref[0] = (y * _sigmoid_exact(y)).astype(o_ref.dtype)   # store bf16


# --------------------------------------------------------------------------------------
# Pallas-backed ops (channel-major layout: (C, N, H, W))
# --------------------------------------------------------------------------------------
def conv_cm(x_cm, cp, *, act=False, residual=None):
    """Conv2d on a channel-major activation via flipped bf16 MXU matmul."""
    Cin, N, H, W = x_cm.shape
    kh, kw = cp["kh"], cp["kw"]
    sh, sw = cp["stride"]
    ph, pw = cp["padding"]
    Cout = cp["Cout"]
    Ho = (H + 2 * ph - kh) // sh + 1
    Wo = (W + 2 * pw - kw) // sw + 1
    M = N * Ho * Wo

    # Transposed im2col, channel-major, bf16 end-to-end (rows ordered (Cin, kh, kw)).
    # TODO(synk): the im2col matrix is still materialized in HBM; replacing it with
    # in-kernel halo-slab DMA is the remaining traffic optimization.
    xp = jnp.pad(x_cm.astype(jnp.bfloat16), ((0, 0), (0, 0), (ph, ph), (pw, pw)))
    taps = [xp[:, :, i:i + sh * (Ho - 1) + 1:sh, j:j + sw * (Wo - 1) + 1:sw]
            for i in range(kh) for j in range(kw)]                  # each (Cin, N, Ho, Wo)
    pat = jnp.stack(taps, axis=1).reshape(Cin * kh * kw, M)

    K, K_pad, tk = cp["K"], cp["K_pad"], cp["tk"]
    nk = K_pad // tk
    M_pad = max(_round_up(M, 128), 128)
    if K_pad > K or M_pad > M:
        pat = jnp.pad(pat, ((0, K_pad - K), (0, M_pad - M)))

    tc = cp["tc"]
    tm = _pick_m_tile(M_pad, K_pad, tk, tc)

    in_specs = [
        pl.BlockSpec((tc, K_pad), lambda c, m, k: (c, 0)),   # weight: resident full-K block
        pl.BlockSpec((tk, tm), lambda c, m, k: (k, m)),      # patches (bf16)
        pl.BlockSpec((tc, 1), lambda c, m, k: (c, 0)),       # bias (f32)
    ]
    args = [cp["w"], pat, cp["b"]]

    fuse_res = residual is not None
    if fuse_res:
        r = residual.reshape(Cout, M).astype(jnp.bfloat16)
        if M_pad > M:
            r = jnp.pad(r, ((0, 0), (0, M_pad - M)))
        in_specs.append(pl.BlockSpec((tc, tm), lambda c, m, k: (c, m)))
        args.append(r)

    out = pl.pallas_call(
        functools.partial(_conv_mm_kernel, act=act, fuse_res=fuse_res, tk=tk, nk=nk),
        out_shape=jax.ShapeDtypeStruct((Cout, M_pad), jnp.bfloat16),
        grid=(Cout // tc, M_pad // tm, nk),
        in_specs=in_specs,
        out_specs=pl.BlockSpec((tc, tm), lambda c, m, k: (c, m)),
        scratch_shapes=[pltpu.VMEM((tc, tm), jnp.float32)],
        compiler_params=pltpu.CompilerParams(
            dimension_semantics=("parallel", "parallel", "arbitrary"),
            vmem_limit_bytes=_VMEM_LIMIT),
    )(*args)

    if M_pad > M:
        out = out[:, :M]
    return out.reshape(Cout, N, Ho, Wo)


def gn_silu_cm(x_cm, gamma, beta, eps=1e-5):
    """Fused GroupNorm + SiLU on a channel-major activation; emits bf16.
    gamma/beta: (G, cpg, 1, 1).  One group per grid step (G >= 2 parallel blocks)."""
    C, N, H, W = x_cm.shape
    G = gamma.shape[0]
    cpg = C // G
    HW = H * W
    xr = x_cm.reshape(G, cpg, N, HW)
    out = pl.pallas_call(
        functools.partial(_gn_silu_kernel, eps=eps),
        out_shape=jax.ShapeDtypeStruct(xr.shape, jnp.bfloat16),
        grid=(G,),
        in_specs=[
            pl.BlockSpec((1, cpg, N, HW), lambda g: (g, 0, 0, 0)),
            pl.BlockSpec((1, cpg, 1, 1), lambda g: (g, 0, 0, 0)),
            pl.BlockSpec((1, cpg, 1, 1), lambda g: (g, 0, 0, 0)),
        ],
        out_specs=pl.BlockSpec((1, cpg, N, HW), lambda g: (g, 0, 0, 0)),
        compiler_params=pltpu.CompilerParams(
            dimension_semantics=("parallel",),
            vmem_limit_bytes=_VMEM_LIMIT),
    )(xr, gamma, beta)
    return out.reshape(C, N, H, W)


# --------------------------------------------------------------------------------------
# Parameter construction (PyTorch-like) and kernel-ready preparation
# --------------------------------------------------------------------------------------
def init_conv(key, cout, cin, kh, kw, scale=0.05):
    kw_, kb_ = jax.random.split(key)
    return {"w": scale * jax.random.normal(kw_, (cout, cin, kh, kw), jnp.float32),
            "b": 0.01 * jax.random.normal(kb_, (cout,), jnp.float32)}


def init_conv_block(key, cin, cout, kh, kw, use_norm):
    p = {"conv": init_conv(key, cout, cin, kh, kw)}
    if use_norm:
        p["gn_w"] = jnp.ones((cin,), jnp.float32)   # PyTorch GroupNorm default affine init
        p["gn_b"] = jnp.zeros((cin,), jnp.float32)
    return p


def build_params(key, cfg):
    in_ch, ch = cfg["in_channels"], cfg["channels"]
    mult = cfg["multipliers"]
    keys = jax.random.split(key, 16)
    ki = iter(keys)
    params = {"to_in": init_conv_block(next(ki), in_ch, ch,
                                       cfg["kernel_sizes"][0][0], cfg["kernel_sizes"][0][1],
                                       use_norm=False),
              "blocks": []}
    for i, (kernel, _, nblocks, factor) in enumerate(zip(
            cfg["kernel_sizes"][1:], cfg["strides"][1:], cfg["num_blocks"][1:], cfg["factors"][1:])):
        cin = ch * mult[i]
        cout = ch * mult[i + 1]
        blk = {"resnets": []}
        if not all(f == 1 for f in factor):
            blk["down"] = init_conv(next(ki), cout, cin, factor[0] * 2 + 1, factor[1] * 2 + 1)
        for _ in range(nblocks):
            blk["resnets"].append({
                "block1": init_conv_block(next(ki), cout, cout, kernel[0], kernel[1], True),
                "block2": init_conv_block(next(ki), cout, cout, 3, 3, True),
            })
        params["blocks"].append(blk)
    return params


def prep_conv(p, kernel, stride, padding=None):
    """One-time (hoisted) weight reshape + bf16 cast + K padding; bias -> (Cout, 1)."""
    kh, kw = int(kernel[0]), int(kernel[1])
    if padding is None:
        padding = ((kh - 1) // 2, (kw - 1) // 2)
    w, b = p["w"], p["b"]
    Cout, Cin = w.shape[0], w.shape[1]
    K = Cin * kh * kw
    K_pad, tk = _k_tiling(K)
    tc = 256 if (Cout > 256 and Cout % 256 == 0) else Cout   # Cout tiling for big layers
    wmat = w.reshape(Cout, K).astype(jnp.bfloat16)
    if K_pad > K:
        wmat = jnp.pad(wmat, ((0, 0), (0, K_pad - K)))
    return dict(w=wmat, b=b.reshape(Cout, 1).astype(jnp.float32),
                kh=kh, kw=kw, stride=(int(stride[0]), int(stride[1])),
                padding=(int(padding[0]), int(padding[1])),
                K=K, K_pad=K_pad, tk=tk, tc=tc, Cout=Cout)


def prepare_params(params, cfg):
    G = cfg["resnet_groups"]

    def prep_gn(gw, gb):
        return (gw.reshape(G, -1, 1, 1).astype(jnp.float32),
                gb.reshape(G, -1, 1, 1).astype(jnp.float32))

    prep = {"to_in": prep_conv(params["to_in"]["conv"],
                               cfg["kernel_sizes"][0], cfg["strides"][0]),
            "blocks": []}
    for i, bp in enumerate(params["blocks"]):
        kernel = cfg["kernel_sizes"][i + 1]
        stride = cfg["strides"][i + 1]
        factor = cfg["factors"][i + 1]
        pb = {"resnets": []}
        if "down" in bp:
            kdown = [f * 2 + 1 for f in factor]
            pb["down"] = prep_conv(bp["down"], kdown, factor, padding=factor)
        for rp in bp["resnets"]:
            g1, b1 = prep_gn(rp["block1"]["gn_w"], rp["block1"]["gn_b"])
            g2, b2 = prep_gn(rp["block2"]["gn_w"], rp["block2"]["gn_b"])
            pb["resnets"].append({
                "gn1_g": g1, "gn1_b": b1,
                "conv1": prep_conv(rp["block1"]["conv"], kernel, stride),
                "gn2_g": g2, "gn2_b": b2,
                "conv2": prep_conv(rp["block2"]["conv"], (3, 3), (1, 1)),
            })
        prep["blocks"].append(pb)
    return prep


# --------------------------------------------------------------------------------------
# Pallas-backed CNNEncoder forward
# --------------------------------------------------------------------------------------
def encoder_pallas(x_nchw, prep, cfg):
    x = jnp.transpose(x_nchw, (1, 0, 2, 3))            # NCHW -> channel-major (C, N, H, W)
    x = conv_cm(x, prep["to_in"], act=True)            # to_in: SiLU fused into the matmul
    for bp in prep["blocks"]:
        if "down" in bp:
            x = conv_cm(x, bp["down"])                 # Downsample2d (strided conv)
        for rp in bp["resnets"]:
            h = gn_silu_cm(x, rp["gn1_g"], rp["gn1_b"])
            h = conv_cm(h, rp["conv1"])
            h = gn_silu_cm(h, rp["gn2_g"], rp["gn2_b"])
            x = conv_cm(h, rp["conv2"], residual=x)    # residual add fused in epilogue
    # to_out is nn.Identity (ch_matching=None).
    return jnp.transpose(x, (1, 0, 2, 3)).astype(jnp.float32)   # back to NCHW, f32 out


# --------------------------------------------------------------------------------------
# Pure-JAX reference (NCHW, f32) for the correctness check
# --------------------------------------------------------------------------------------
def conv2d_ref(x, w, b, stride, padding):
    y = jax.lax.conv_general_dilated(
        x, w, window_strides=tuple(stride),
        padding=[(padding[0], padding[0]), (padding[1], padding[1])],
        dimension_numbers=("NCHW", "OIHW", "NCHW"))
    return y + b.reshape(1, -1, 1, 1)


def gn_silu_ref(x, gamma, beta, num_groups, eps=1e-5):
    N, C, H, W = x.shape
    xr = x.reshape(N, num_groups, -1)
    mean = xr.mean(axis=2, keepdims=True)
    var = ((xr - mean) ** 2).mean(axis=2, keepdims=True)
    xn = ((xr - mean) / jnp.sqrt(var + eps)).reshape(N, C, H, W)
    y = xn * gamma.reshape(1, C, 1, 1) + beta.reshape(1, C, 1, 1)
    return y * jax.nn.sigmoid(y)


def silu_ref(x):
    return x * jax.nn.sigmoid(x)


def encoder_ref(x, params, cfg):
    G = cfg["resnet_groups"]

    def conv(x, p, stride, pad):
        return conv2d_ref(x, p["w"], p["b"], stride, pad)

    k0 = cfg["kernel_sizes"][0]
    x = conv(silu_ref(x), params["to_in"]["conv"], tuple(cfg["strides"][0]),
             tuple((kk - 1) // 2 for kk in k0))
    for i, bp in enumerate(params["blocks"]):
        kernel = cfg["kernel_sizes"][i + 1]
        stride = tuple(cfg["strides"][i + 1])
        factor = tuple(cfg["factors"][i + 1])
        if not all(f == 1 for f in factor):
            x = conv(x, bp["down"], factor, factor)
        for rp in bp["resnets"]:
            h = gn_silu_ref(x, rp["block1"]["gn_w"], rp["block1"]["gn_b"], G)
            h = conv(h, rp["block1"]["conv"], stride, tuple((kk - 1) // 2 for kk in kernel))
            h = gn_silu_ref(h, rp["block2"]["gn_w"], rp["block2"]["gn_b"], G)
            h = conv(h, rp["block2"]["conv"], (1, 1), (1, 1))
            x = h + x
    return x


# --------------------------------------------------------------------------------------
if __name__ == "__main__":
    cfg = dict(
        in_channels=3,
        channels=16,
        multipliers=[1, 2],
        factors=[[1, 1], [2, 2]],
        num_blocks=[0, 1],
        kernel_sizes=[[3, 3], [3, 3]],
        strides=[[1, 1], [1, 1]],
        resnet_groups=8,
    )
    # TODO(synk): optional pickle `state` checkpoint loading has no Pallas equivalent;
    # parameters are initialized deterministically in-script instead.

    root = jax.random.PRNGKey(0)
    k_params, k_x = jax.random.split(root)
    params = build_params(k_params, cfg)
    prep = prepare_params(params, cfg)           # one-time weight reshape/cast, outside jit
    x = jax.random.normal(k_x, (2, 3, 16, 16), jnp.float32)

    out = jax.jit(lambda xx: encoder_pallas(xx, prep, cfg))(x)
    out = jax.block_until_ready(out)

    ref = encoder_ref(x, params, cfg)
    assert out.shape == (2, 32, 8, 8), out.shape
    max_err = float(jnp.max(jnp.abs(out - ref)))
    # Tolerance loosened vs. the all-f32 version: activations are now carried in bf16
    # between layers (per the perf review); matmul accumulation is still f32.
    assert jnp.allclose(out, ref, rtol=5e-2, atol=5e-2), max_err

    print("KERNEL_OK")
</pallas_src>

<mosaic_0001>
module attributes {stable_mosaic.version = 11 : i64} {
  func.func @_conv_mm_kernel(%arg0: i32, %arg1: i32, %arg2: i32, %arg3: memref<16x32xbf16, #tpu.memory_space<vmem>>, %arg4: memref<32x256xbf16, #tpu.memory_space<vmem>>, %arg5: memref<16x1xf32, #tpu.memory_space<vmem>>, %arg6: memref<16x256xbf16, #tpu.memory_space<vmem>>, %arg7: memref<16x256xf32, #tpu.memory_space<vmem>>) attributes {dimension_semantics = [#tpu.dimension_semantics<parallel>, #tpu.dimension_semantics<parallel>, #tpu.dimension_semantics<arbitrary>], iteration_bounds = array<i64: 1, 2, 1>, scalar_prefetch = 0 : i64, scratch_operands = 1 : i64, tpu.core_type = #tpu.core_type<tc>, window_params = [{transform_indices = @transform_0, window_bounds = array<i64: 16, 32>}, {transform_indices = @transform_1, window_bounds = array<i64: 32, 256>}, {transform_indices = @transform_2, window_bounds = array<i64: 16, 1>}, {transform_indices = @transform_3, window_bounds = array<i64: 16, 256>}]} {
    %c0_i32 = arith.constant 0 : i32
    %0 = arith.cmpi eq, %arg2, %c0_i32 : i32
    %1 = arith.extui %0 : i1 to i32
    %c0_i32_0 = arith.constant 0 : i32
    %2 = arith.cmpi ne, %1, %c0_i32_0 : i32
    scf.if %2 {
      %cst_13 = arith.constant 0.000000e+00 : f32
      %22 = vector.broadcast %cst_13 : f32 to vector<16x256xf32>
      %c0_14 = arith.constant 0 : index
      %c0_15 = arith.constant 0 : index
      %23 = vector.load %arg7[%c0_14, %c0_15] : memref<16x256xf32, #tpu.memory_space<vmem>>, vector<16x256xf32>
      tpu.vector_store %arg7[%c0_14, %c0_15], %22 {strides = array<i32>} : memref<16x256xf32, #tpu.memory_space<vmem>>, vector<16x256xf32>,
    } else {
    }
    %c0 = arith.constant 0 : index
    %c0_1 = arith.constant 0 : index
    %3 = vector.load %arg3[%c0, %c0_1] : memref<16x32xbf16, #tpu.memory_space<vmem>>, vector<16x32xbf16>
    %c0_2 = arith.constant 0 : index
    %c0_3 = arith.constant 0 : index
    %4 = vector.load %arg4[%c0_2, %c0_3] : memref<32x256xbf16, #tpu.memory_space<vmem>>, vector<32x256xbf16>
    %5 = arith.extf %4 : vector<32x256xbf16> to vector<32x256xf32>
    %cst = arith.constant 0.000000e+00 : f32
    %6 = vector.broadcast %cst : f32 to vector<32x256xf32>
    %7 = arith.subf %6, %5 : vector<32x256xf32>
    %8 = math.exp %7 : vector<32x256xf32>
    %cst_4 = arith.constant 1.000000e+00 : f32
    %9 = vector.broadcast %cst_4 : f32 to vector<32x256xf32>
    %10 = arith.addf %9, %8 : vector<32x256xf32>
    %cst_5 = arith.constant 1.000000e+00 : f32
    %11 = vector.broadcast %cst_5 : f32 to vector<32x256xf32>
    %12 = arith.divf %11, %10 : vector<32x256xf32>
    %13 = arith.mulf %5, %12 : vector<32x256xf32>
    %14 = arith.truncf %13 : vector<32x256xf32> to vector<32x256xbf16>
    %c0_6 = arith.constant 0 : index
    %c0_7 = arith.constant 0 : index
    %15 = vector.load %arg7[%c0_6, %c0_7] : memref<16x256xf32, #tpu.memory_space<vmem>>, vector<16x256xf32>
    %cst_8 = arith.constant dense<0.000000e+00> : vector<16x256xf32>
    %16 = tpu.matmul %3, %14, %cst_8 {dimension_numbers = #tpu.dot_dimension_numbers<[1], [0], [0], [1], [0, 0, 1, 1], [], []>} : vector<16x32xbf16>, vector<32x256xbf16>, vector<16x256xf32> -> vector<16x256xf32>
    %17 = arith.addf %15, %16 : vector<16x256xf32>
    %c0_9 = arith.constant 0 : index
    %c0_10 = arith.constant 0 : index
    %18 = vector.load %arg7[%c0_9, %c0_10] : memref<16x256xf32, #tpu.memory_space<vmem>>, vector<16x256xf32>
    tpu.vector_store %arg7[%c0_9, %c0_10], %17 {strides = array<i32>} : memref<16x256xf32, #tpu.memory_space<vmem>>, vector<16x256xf32>,
    %c0_i32_11 = arith.constant 0 : i32
    %19 = arith.cmpi eq, %arg2, %c0_i32_11 : i32
    %20 = arith.extui %19 : i1 to i32
    %c0_i32_12 = arith.constant 0 : i32
    %21 = arith.cmpi ne, %20, %c0_i32_12 : i32
    scf.if %21 {
      %c0_13 = arith.constant 0 : index
      %c0_14 = arith.constant 0 : index
      %22 = vector.load %arg7[%c0_13, %c0_14] : memref<16x256xf32, #tpu.memory_space<vmem>>, vector<16x256xf32>
      %c0_15 = arith.constant 0 : index
      %c0_16 = arith.constant 0 : index
      %23 = vector.load %arg5[%c0_15, %c0_16] : memref<16x1xf32, #tpu.memory_space<vmem>>, vector<16x1xf32>
      %24 = vector.broadcast %23 : vector<16x1xf32> to vector<16x256xf32>
      %25 = arith.addf %22, %24 : vector<16x256xf32>
      %26 = arith.truncf %25 : vector<16x256xf32> to vector<16x256xbf16>
      %c0_17 = arith.constant 0 : index
      %c0_18 = arith.constant 0 : index
      %27 = vector.load %arg6[%c0_17, %c0_18] : memref<16x256xbf16, #tpu.memory_space<vmem>>, vector<16x256xbf16>
      tpu.vector_store %arg6[%c0_17, %c0_18], %26 {strides = array<i32>} : memref<16x256xbf16, #tpu.memory_space<vmem>>, vector<16x256xbf16>,
    } else {
    }
    return
  }
  func.func @transform_0(%arg0: i32, %arg1: i32, %arg2: i32) -> (i32, i32) {
    %c0_i32 = arith.constant 0 : i32
    %c0_i32_0 = arith.constant 0 : i32
    return %arg0, %c0_i32 : i32, i32
  }
  func.func @transform_1(%arg0: i32, %arg1: i32, %arg2: i32) -> (i32, i32) {
    %c0_i32 = arith.constant 0 : i32
    return %arg2, %arg1 : i32, i32
  }
  func.func @transform_2(%arg0: i32, %arg1: i32, %arg2: i32) -> (i32, i32) {
    %c0_i32 = arith.constant 0 : i32
    %c0_i32_0 = arith.constant 0 : i32
    return %arg0, %c0_i32 : i32, i32
  }
  func.func @transform_3(%arg0: i32, %arg1: i32, %arg2: i32) -> (i32, i32) {
    %c0_i32 = arith.constant 0 : i32
    return %arg0, %arg1 : i32, i32
  }
}

module attributes {stable_mosaic.version = 11 : i64} {
  func.func @_conv_mm_kernel(%arg0: i32, %arg1: i32, %arg2: i32, %arg3: memref<32x400xbf16, #tpu.memory_space<vmem>>, %arg4: memref<400x128xbf16, #tpu.memory_space<vmem>>, %arg5: memref<32x1xf32, #tpu.memory_space<vmem>>, %arg6: memref<32x128xbf16, #tpu.memory_space<vmem>>, %arg7: memref<32x128xf32, #tpu.memory_space<vmem>>) attributes {dimension_semantics = [#tpu.dimension_semantics<parallel>, #tpu.dimension_semantics<parallel>, #tpu.dimension_semantics<arbitrary>], iteration_bounds = array<i64: 1, 1, 1>, scalar_prefetch = 0 : i64, scratch_operands = 1 : i64, tpu.core_type = #tpu.core_type<tc>, window_params = [{transform_indices = @transform_0, window_bounds = array<i64: 32, 400>}, {transform_indices = @transform_1, window_bounds = array<i64: 400, 128>}, {transform_indices = @transform_2, window_bounds = array<i64: 32, 1>}, {transform_indices = @transform_3, window_bounds = array<i64: 32, 128>}]} {
    %c0_i32 = arith.constant 0 : i32
    %0 = arith.cmpi eq, %arg2, %c0_i32 : i32
    %1 = arith.extui %0 : i1 to i32
    %c0_i32_0 = arith.constant 0 : i32
    %2 = arith.cmpi ne, %1, %c0_i32_0 : i32
    scf.if %2 {
      %cst_10 = arith.constant 0.000000e+00 : f32
      %12 = vector.broadcast %cst_10 : f32 to vector<32x128xf32>
      %c0_11 = arith.constant 0 : index
      %c0_12 = arith.constant 0 : index
      %13 = vector.load %arg7[%c0_11, %c0_12] : memref<32x128xf32, #tpu.memory_space<vmem>>, vector<32x128xf32>
      tpu.vector_store %arg7[%c0_11, %c0_12], %12 {strides = array<i32>} : memref<32x128xf32, #tpu.memory_space<vmem>>, vector<32x128xf32>,
    } else {
    }
    %c0 = arith.constant 0 : index
    %c0_1 = arith.constant 0 : index
    %3 = vector.load %arg3[%c0, %c0_1] : memref<32x400xbf16, #tpu.memory_space<vmem>>, vector<32x400xbf16>
    %c0_2 = arith.constant 0 : index
    %c0_3 = arith.constant 0 : index
    %4 = vector.load %arg4[%c0_2, %c0_3] : memref<400x128xbf16, #tpu.memory_space<vmem>>, vector<400x128xbf16>
    %c0_4 = arith.constant 0 : index
    %c0_5 = arith.constant 0 : index
    %5 = vector.load %arg7[%c0_4, %c0_5] : memref<32x128xf32, #tpu.memory_space<vmem>>, vector<32x128xf32>
    %cst = arith.constant dense<0.000000e+00> : vector<32x128xf32>
    %6 = tpu.matmul %3, %4, %cst {dimension_numbers = #tpu.dot_dimension_numbers<[1], [0], [0], [1], [0, 0, 1, 1], [], []>} : vector<32x400xbf16>, vector<400x128xbf16>, vector<32x128xf32> -> vector<32x128xf32>
    %7 = arith.addf %5, %6 : vector<32x128xf32>
    %c0_6 = arith.constant 0 : index
    %c0_7 = arith.constant 0 : index
    %8 = vector.load %arg7[%c0_6, %c0_7] : memref<32x128xf32, #tpu.memory_space<vmem>>, vector<32x128xf32>
    tpu.vector_store %arg7[%c0_6, %c0_7], %7 {strides = array<i32>} : memref<32x128xf32, #tpu.memory_space<vmem>>, vector<32x128xf32>,
    %c0_i32_8 = arith.constant 0 : i32
    %9 = arith.cmpi eq, %arg2, %c0_i32_8 : i32
    %10 = arith.extui %9 : i1 to i32
    %c0_i32_9 = arith.constant 0 : i32
    %11 = arith.cmpi ne, %10, %c0_i32_9 : i32
    scf.if %11 {
      %c0_10 = arith.constant 0 : index
      %c0_11 = arith.constant 0 : index
      %12 = vector.load %arg7[%c0_10, %c0_11] : memref<32x128xf32, #tpu.memory_space<vmem>>, vector<32x128xf32>
      %c0_12 = arith.constant 0 : index
      %c0_13 = arith.constant 0 : index
      %13 = vector.load %arg5[%c0_12, %c0_13] : memref<32x1xf32, #tpu.memory_space<vmem>>, vector<32x1xf32>
      %14 = vector.broadcast %13 : vector<32x1xf32> to vector<32x128xf32>
      %15 = arith.addf %12, %14 : vector<32x128xf32>
      %16 = arith.truncf %15 : vector<32x128xf32> to vector<32x128xbf16>
      %c0_14 = arith.constant 0 : index
      %c0_15 = arith.constant 0 : index
      %17 = vector.load %arg6[%c0_14, %c0_15] : memref<32x128xbf16, #tpu.memory_space<vmem>>, vector<32x128xbf16>
      tpu.vector_store %arg6[%c0_14, %c0_15], %16 {strides = array<i32>} : memref<32x128xbf16, #tpu.memory_space<vmem>>, vector<32x128xbf16>,
    } else {
    }
    return
  }
  func.func @transform_0(%arg0: i32, %arg1: i32, %arg2: i32) -> (i32, i32) {
    %c0_i32 = arith.constant 0 : i32
    %c0_i32_0 = arith.constant 0 : i32
    return %arg0, %c0_i32 : i32, i32
  }
  func.func @transform_1(%arg0: i32, %arg1: i32, %arg2: i32) -> (i32, i32) {
    %c0_i32 = arith.constant 0 : i32
    return %arg2, %arg1 : i32, i32
  }
  func.func @transform_2(%arg0: i32, %arg1: i32, %arg2: i32) -> (i32, i32) {
    %c0_i32 = arith.constant 0 : i32
    %c0_i32_0 = arith.constant 0 : i32
    return %arg0, %c0_i32 : i32, i32
  }
  func.func @transform_3(%arg0: i32, %arg1: i32, %arg2: i32) -> (i32, i32) {
    %c0_i32 = arith.constant 0 : i32
    return %arg0, %arg1 : i32, i32
  }
}

module attributes {stable_mosaic.version = 11 : i64} {
  func.func @_gn_silu_kernel(%arg0: i32, %arg1: memref<1x4x2x64xbf16, #tpu.memory_space<vmem>>, %arg2: memref<1x4x1x1xf32, #tpu.memory_space<vmem>>, %arg3: memref<1x4x1x1xf32, #tpu.memory_space<vmem>>, %arg4: memref<1x4x2x64xbf16, #tpu.memory_space<vmem>>) attributes {dimension_semantics = [#tpu.dimension_semantics<parallel>], iteration_bounds = array<i64: 8>, scalar_prefetch = 0 : i64, scratch_operands = 0 : i64, tpu.core_type = #tpu.core_type<tc>, window_params = [{transform_indices = @transform_0, window_bounds = array<i64: 1, 4, 2, 64>}, {transform_indices = @transform_1, window_bounds = array<i64: 1, 4, 1, 1>}, {transform_indices = @transform_2, window_bounds = array<i64: 1, 4, 1, 1>}, {transform_indices = @transform_3, window_bounds = array<i64: 1, 4, 2, 64>}]} {
    %c0 = arith.constant 0 : index
    %c0_0 = arith.constant 0 : index
    %c0_1 = arith.constant 0 : index
    %c0_2 = arith.constant 0 : index
    %0 = vector.load %arg1[%c0, %c0_0, %c0_1, %c0_2] : memref<1x4x2x64xbf16, #tpu.memory_space<vmem>>, vector<1x4x2x64xbf16>
    %1 = vector.shape_cast %0 : vector<1x4x2x64xbf16> to vector<4x2x64xbf16>
    %2 = arith.extf %1 : vector<4x2x64xbf16> to vector<4x2x64xf32>
    %cst = arith.constant dense<0.000000e+00> : vector<4x2xf32>
    %3 = vector.multi_reduction <add>, %2, %cst [2] : vector<4x2x64xf32> to vector<4x2xf32>
    %4 = vector.shape_cast %3 : vector<4x2xf32> to vector<4x2x1xf32>
    %cst_3 = arith.constant 6.400000e+01 : f32
    %5 = vector.broadcast %cst_3 : f32 to vector<4x2x1xf32>
    %6 = arith.divf %4, %5 : vector<4x2x1xf32>
    %cst_4 = arith.constant dense<0.000000e+00> : vector<2x1xf32>
    %7 = vector.multi_reduction <add>, %6, %cst_4 [0] : vector<4x2x1xf32> to vector<2x1xf32>
    %8 = vector.shape_cast %7 : vector<2x1xf32> to vector<1x2x1xf32>
    %cst_5 = arith.constant 4.000000e+00 : f32
    %9 = vector.broadcast %cst_5 : f32 to vector<1x2x1xf32>
    %10 = arith.divf %8, %9 : vector<1x2x1xf32>
    %11 = vector.broadcast %10 : vector<1x2x1xf32> to vector<4x2x64xf32>
    %12 = arith.subf %2, %11 : vector<4x2x64xf32>
    %13 = arith.mulf %12, %12 : vector<4x2x64xf32>
    %cst_6 = arith.constant dense<0.000000e+00> : vector<4x2xf32>
    %14 = vector.multi_reduction <add>, %13, %cst_6 [2] : vector<4x2x64xf32> to vector<4x2xf32>
    %15 = vector.shape_cast %14 : vector<4x2xf32> to vector<4x2x1xf32>
    %cst_7 = arith.constant 6.400000e+01 : f32
    %16 = vector.broadcast %cst_7 : f32 to vector<4x2x1xf32>
    %17 = arith.divf %15, %16 : vector<4x2x1xf32>
    %cst_8 = arith.constant dense<0.000000e+00> : vector<2x1xf32>
    %18 = vector.multi_reduction <add>, %17, %cst_8 [0] : vector<4x2x1xf32> to vector<2x1xf32>
    %19 = vector.shape_cast %18 : vector<2x1xf32> to vector<1x2x1xf32>
    %cst_9 = arith.constant 4.000000e+00 : f32
    %20 = vector.broadcast %cst_9 : f32 to vector<1x2x1xf32>
    %21 = arith.divf %19, %20 : vector<1x2x1xf32>
    %cst_10 = arith.constant 9.99999974E-6 : f32
    %22 = vector.broadcast %cst_10 : f32 to vector<1x2x1xf32>
    %23 = arith.addf %21, %22 : vector<1x2x1xf32>
    %24 = math.rsqrt %23 : vector<1x2x1xf32>
    %25 = vector.broadcast %24 : vector<1x2x1xf32> to vector<4x2x64xf32>
    %26 = arith.mulf %12, %25 : vector<4x2x64xf32>
    %c0_11 = arith.constant 0 : index
    %c0_12 = arith.constant 0 : index
    %c0_13 = arith.constant 0 : index
    %c0_14 = arith.constant 0 : index
    %27 = vector.load %arg2[%c0_11, %c0_12, %c0_13, %c0_14] : memref<1x4x1x1xf32, #tpu.memory_space<vmem>>, vector<1x4x1x1xf32>
    %28 = vector.shape_cast %27 : vector<1x4x1x1xf32> to vector<4x1x1xf32>
    %29 = vector.broadcast %28 : vector<4x1x1xf32> to vector<4x2x64xf32>
    %30 = arith.mulf %26, %29 : vector<4x2x64xf32>
    %c0_15 = arith.constant 0 : index
    %c0_16 = arith.constant 0 : index
    %c0_17 = arith.constant 0 : index
    %c0_18 = arith.constant 0 : index
    %31 = vector.load %arg3[%c0_15, %c0_16, %c0_17, %c0_18] : memref<1x4x1x1xf32, #tpu.memory_space<vmem>>, vector<1x4x1x1xf32>
    %32 = vector.shape_cast %31 : vector<1x4x1x1xf32> to vector<4x1x1xf32>
    %33 = vector.broadcast %32 : vector<4x1x1xf32> to vector<4x2x64xf32>
    %34 = arith.addf %30, %33 : vector<4x2x64xf32>
    %cst_19 = arith.constant 0.000000e+00 : f32
    %35 = vector.broadcast %cst_19 : f32 to vector<4x2x64xf32>
    %36 = arith.subf %35, %34 : vector<4x2x64xf32>
    %37 = math.exp %36 : vector<4x2x64xf32>
    %cst_20 = arith.constant 1.000000e+00 : f32
    %38 = vector.broadcast %cst_20 : f32 to vector<4x2x64xf32>
    %39 = arith.addf %38, %37 : vector<4x2x64xf32>
    %cst_21 = arith.constant 1.000000e+00 : f32
    %40 = vector.broadcast %cst_21 : f32 to vector<4x2x64xf32>
    %41 = arith.divf %40, %39 : vector<4x2x64xf32>
    %42 = arith.mulf %34, %41 : vector<4x2x64xf32>
    %43 = arith.truncf %42 : vector<4x2x64xf32> to vector<4x2x64xbf16>
    %c0_22 = arith.constant 0 : index
    %c0_23 = arith.constant 0 : index
    %c0_24 = arith.constant 0 : index
    %c0_25 = arith.constant 0 : index
    %44 = vector.load %arg4[%c0_22, %c0_23, %c0_24, %c0_25] : memref<1x4x2x64xbf16, #tpu.memory_space<vmem>>, vector<1x4x2x64xbf16>
    %45 = vector.shape_cast %44 : vector<1x4x2x64xbf16> to vector<4x2x64xbf16>
    %46 = vector.shape_cast %43 : vector<4x2x64xbf16> to vector<1x4x2x64xbf16>
    tpu.vector_store %arg4[%c0_22, %c0_23, %c0_24, %c0_25], %46 {strides = array<i32>} : memref<1x4x2x64xbf16, #tpu.memory_space<vmem>>, vector<1x4x2x64xbf16>,
    return
  }
  func.func @transform_0(%arg0: i32) -> (i32, i32, i32, i32) {
    %c0_i32 = arith.constant 0 : i32
    %c0_i32_0 = arith.constant 0 : i32
    %c0_i32_1 = arith.constant 0 : i32
    %c0_i32_2 = arith.constant 0 : i32
    return %arg0, %c0_i32, %c0_i32_0, %c0_i32_1 : i32, i32, i32, i32
  }
  func.func @transform_1(%arg0: i32) -> (i32, i32, i32, i32) {
    %c0_i32 = arith.constant 0 : i32
    %c0_i32_0 = arith.constant 0 : i32
    %c0_i32_1 = arith.constant 0 : i32
    %c0_i32_2 = arith.constant 0 : i32
    return %arg0, %c0_i32, %c0_i32_0, %c0_i32_1 : i32, i32, i32, i32
  }
  func.func @transform_2(%arg0: i32) -> (i32, i32, i32, i32) {
    %c0_i32 = arith.constant 0 : i32
    %c0_i32_0 = arith.constant 0 : i32
    %c0_i32_1 = arith.constant 0 : i32
    %c0_i32_2 = arith.constant 0 : i32
    return %arg0, %c0_i32, %c0_i32_0, %c0_i32_1 : i32, i32, i32, i32
  }
  func.func @transform_3(%arg0: i32) -> (i32, i32, i32, i32) {
    %c0_i32 = arith.constant 0 : i32
    %c0_i32_0 = arith.constant 0 : i32
    %c0_i32_1 = arith.constant 0 : i32
    %c0_i32_2 = arith.constant 0 : i32
    return %arg0, %c0_i32, %c0_i32_0, %c0_i32_1 : i32, i32, i32, i32
  }
}

module attributes {stable_mosaic.version = 11 : i64} {
  func.func @_conv_mm_kernel(%arg0: i32, %arg1: i32, %arg2: i32, %arg3: memref<32x288xbf16, #tpu.memory_space<vmem>>, %arg4: memref<288x128xbf16, #tpu.memory_space<vmem>>, %arg5: memref<32x1xf32, #tpu.memory_space<vmem>>, %arg6: memref<32x128xbf16, #tpu.memory_space<vmem>>, %arg7: memref<32x128xf32, #tpu.memory_space<vmem>>) attributes {dimension_semantics = [#tpu.dimension_semantics<parallel>, #tpu.dimension_semantics<parallel>, #tpu.dimension_semantics<arbitrary>], iteration_bounds = array<i64: 1, 1, 1>, scalar_prefetch = 0 : i64, scratch_operands = 1 : i64, tpu.core_type = #tpu.core_type<tc>, window_params = [{transform_indices = @transform_0, window_bounds = array<i64: 32, 288>}, {transform_indices = @transform_1, window_bounds = array<i64: 288, 128>}, {transform_indices = @transform_2, window_bounds = array<i64: 32, 1>}, {transform_indices = @transform_3, window_bounds = array<i64: 32, 128>}]} {
    %c0_i32 = arith.constant 0 : i32
    %0 = arith.cmpi eq, %arg2, %c0_i32 : i32
    %1 = arith.extui %0 : i1 to i32
    %c0_i32_0 = arith.constant 0 : i32
    %2 = arith.cmpi ne, %1, %c0_i32_0 : i32
    scf.if %2 {
      %cst_10 = arith.constant 0.000000e+00 : f32
      %12 = vector.broadcast %cst_10 : f32 to vector<32x128xf32>
      %c0_11 = arith.constant 0 : index
      %c0_12 = arith.constant 0 : index
      %13 = vector.load %arg7[%c0_11, %c0_12] : memref<32x128xf32, #tpu.memory_space<vmem>>, vector<32x128xf32>
      tpu.vector_store %arg7[%c0_11, %c0_12], %12 {strides = array<i32>} : memref<32x128xf32, #tpu.memory_space<vmem>>, vector<32x128xf32>,
    } else {
    }
    %c0 = arith.constant 0 : index
    %c0_1 = arith.constant 0 : index
    %3 = vector.load %arg3[%c0, %c0_1] : memref<32x288xbf16, #tpu.memory_space<vmem>>, vector<32x288xbf16>
    %c0_2 = arith.constant 0 : index
    %c0_3 = arith.constant 0 : index
    %4 = vector.load %arg4[%c0_2, %c0_3] : memref<288x128xbf16, #tpu.memory_space<vmem>>, vector<288x128xbf16>
    %c0_4 = arith.constant 0 : index
    %c0_5 = arith.constant 0 : index
    %5 = vector.load %arg7[%c0_4, %c0_5] : memref<32x128xf32, #tpu.memory_space<vmem>>, vector<32x128xf32>
    %cst = arith.constant dense<0.000000e+00> : vector<32x128xf32>
    %6 = tpu.matmul %3, %4, %cst {dimension_numbers = #tpu.dot_dimension_numbers<[1], [0], [0], [1], [0, 0, 1, 1], [], []>} : vector<32x288xbf16>, vector<288x128xbf16>, vector<32x128xf32> -> vector<32x128xf32>
    %7 = arith.addf %5, %6 : vector<32x128xf32>
    %c0_6 = arith.constant 0 : index
    %c0_7 = arith.constant 0 : index
    %8 = vector.load %arg7[%c0_6, %c0_7] : memref<32x128xf32, #tpu.memory_space<vmem>>, vector<32x128xf32>
    tpu.vector_store %arg7[%c0_6, %c0_7], %7 {strides = array<i32>} : memref<32x128xf32, #tpu.memory_space<vmem>>, vector<32x128xf32>,
    %c0_i32_8 = arith.constant 0 : i32
    %9 = arith.cmpi eq, %arg2, %c0_i32_8 : i32
    %10 = arith.extui %9 : i1 to i32
    %c0_i32_9 = arith.constant 0 : i32
    %11 = arith.cmpi ne, %10, %c0_i32_9 : i32
    scf.if %11 {
      %c0_10 = arith.constant 0 : index
      %c0_11 = arith.constant 0 : index
      %12 = vector.load %arg7[%c0_10, %c0_11] : memref<32x128xf32, #tpu.memory_space<vmem>>, vector<32x128xf32>
      %c0_12 = arith.constant 0 : index
      %c0_13 = arith.constant 0 : index
      %13 = vector.load %arg5[%c0_12, %c0_13] : memref<32x1xf32, #tpu.memory_space<vmem>>, vector<32x1xf32>
      %14 = vector.broadcast %13 : vector<32x1xf32> to vector<32x128xf32>
      %15 = arith.addf %12, %14 : vector<32x128xf32>
      %16 = arith.truncf %15 : vector<32x128xf32> to vector<32x128xbf16>
      %c0_14 = arith.constant 0 : index
      %c0_15 = arith.constant 0 : index
      %17 = vector.load %arg6[%c0_14, %c0_15] : memref<32x128xbf16, #tpu.memory_space<vmem>>, vector<32x128xbf16>
      tpu.vector_store %arg6[%c0_14, %c0_15], %16 {strides = array<i32>} : memref<32x128xbf16, #tpu.memory_space<vmem>>, vector<32x128xbf16>,
    } else {
    }
    return
  }
  func.func @transform_0(%arg0: i32, %arg1: i32, %arg2: i32) -> (i32, i32) {
    %c0_i32 = arith.constant 0 : i32
    %c0_i32_0 = arith.constant 0 : i32
    return %arg0, %c0_i32 : i32, i32
  }
  func.func @transform_1(%arg0: i32, %arg1: i32, %arg2: i32) -> (i32, i32) {
    %c0_i32 = arith.constant 0 : i32
    return %arg2, %arg1 : i32, i32
  }
  func.func @transform_2(%arg0: i32, %arg1: i32, %arg2: i32) -> (i32, i32) {
    %c0_i32 = arith.constant 0 : i32
    %c0_i32_0 = arith.constant 0 : i32
    return %arg0, %c0_i32 : i32, i32
  }
  func.func @transform_3(%arg0: i32, %arg1: i32, %arg2: i32) -> (i32, i32) {
    %c0_i32 = arith.constant 0 : i32
    return %arg0, %arg1 : i32, i32
  }
}

module attributes {stable_mosaic.version = 11 : i64} {
  func.func @_conv_mm_kernel(%arg0: i32, %arg1: i32, %arg2: i32, %arg3: memref<32x288xbf16, #tpu.memory_space<vmem>>, %arg4: memref<288x128xbf16, #tpu.memory_space<vmem>>, %arg5: memref<32x1xf32, #tpu.memory_space<vmem>>, %arg6: memref<32x128xbf16, #tpu.memory_space<vmem>>, %arg7: memref<32x128xbf16, #tpu.memory_space<vmem>>, %arg8: memref<32x128xf32, #tpu.memory_space<vmem>>) attributes {dimension_semantics = [#tpu.dimension_semantics<parallel>, #tpu.dimension_semantics<parallel>, #tpu.dimension_semantics<arbitrary>], iteration_bounds = array<i64: 1, 1, 1>, scalar_prefetch = 0 : i64, scratch_operands = 1 : i64, tpu.core_type = #tpu.core_type<tc>, window_params = [{transform_indices = @transform_0, window_bounds = array<i64: 32, 288>}, {transform_indices = @transform_1, window_bounds = array<i64: 288, 128>}, {transform_indices = @transform_2, window_bounds = array<i64: 32, 1>}, {transform_indices = @transform_3, window_bounds = array<i64: 32, 128>}, {transform_indices = @transform_4, window_bounds = array<i64: 32, 128>}]} {
    %c0_i32 = arith.constant 0 : i32
    %0 = arith.cmpi eq, %arg2, %c0_i32 : i32
    %1 = arith.extui %0 : i1 to i32
    %c0_i32_0 = arith.constant 0 : i32
    %2 = arith.cmpi ne, %1, %c0_i32_0 : i32
    scf.if %2 {
      %cst_10 = arith.constant 0.000000e+00 : f32
      %12 = vector.broadcast %cst_10 : f32 to vector<32x128xf32>
      %c0_11 = arith.constant 0 : index
      %c0_12 = arith.constant 0 : index
      %13 = vector.load %arg8[%c0_11, %c0_12] : memref<32x128xf32, #tpu.memory_space<vmem>>, vector<32x128xf32>
      tpu.vector_store %arg8[%c0_11, %c0_12], %12 {strides = array<i32>} : memref<32x128xf32, #tpu.memory_space<vmem>>, vector<32x128xf32>,
    } else {
    }
    %c0 = arith.constant 0 : index
    %c0_1 = arith.constant 0 : index
    %3 = vector.load %arg3[%c0, %c0_1] : memref<32x288xbf16, #tpu.memory_space<vmem>>, vector<32x288xbf16>
    %c0_2 = arith.constant 0 : index
    %c0_3 = arith.constant 0 : index
    %4 = vector.load %arg4[%c0_2, %c0_3] : memref<288x128xbf16, #tpu.memory_space<vmem>>, vector<288x128xbf16>
    %c0_4 = arith.constant 0 : index
    %c0_5 = arith.constant 0 : index
    %5 = vector.load %arg8[%c0_4, %c0_5] : memref<32x128xf32, #tpu.memory_space<vmem>>, vector<32x128xf32>
    %cst = arith.constant dense<0.000000e+00> : vector<32x128xf32>
    %6 = tpu.matmul %3, %4, %cst {dimension_numbers = #tpu.dot_dimension_numbers<[1], [0], [0], [1], [0, 0, 1, 1], [], []>} : vector<32x288xbf16>, vector<288x128xbf16>, vector<32x128xf32> -> vector<32x128xf32>
    %7 = arith.addf %5, %6 : vector<32x128xf32>
    %c0_6 = arith.constant 0 : index
    %c0_7 = arith.constant 0 : index
    %8 = vector.load %arg8[%c0_6, %c0_7] : memref<32x128xf32, #tpu.memory_space<vmem>>, vector<32x128xf32>
    tpu.vector_store %arg8[%c0_6, %c0_7], %7 {strides = array<i32>} : memref<32x128xf32, #tpu.memory_space<vmem>>, vector<32x128xf32>,
    %c0_i32_8 = arith.constant 0 : i32
    %9 = arith.cmpi eq, %arg2, %c0_i32_8 : i32
    %10 = arith.extui %9 : i1 to i32
    %c0_i32_9 = arith.constant 0 : i32
    %11 = arith.cmpi ne, %10, %c0_i32_9 : i32
    scf.if %11 {
      %c0_10 = arith.constant 0 : index
      %c0_11 = arith.constant 0 : index
      %12 = vector.load %arg8[%c0_10, %c0_11] : memref<32x128xf32, #tpu.memory_space<vmem>>, vector<32x128xf32>
      %c0_12 = arith.constant 0 : index
      %c0_13 = arith.constant 0 : index
      %13 = vector.load %arg5[%c0_12, %c0_13] : memref<32x1xf32, #tpu.memory_space<vmem>>, vector<32x1xf32>
      %14 = vector.broadcast %13 : vector<32x1xf32> to vector<32x128xf32>
      %15 = arith.addf %12, %14 : vector<32x128xf32>
      %c0_14 = arith.constant 0 : index
      %c0_15 = arith.constant 0 : index
      %16 = vector.load %arg6[%c0_14, %c0_15] : memref<32x128xbf16, #tpu.memory_space<vmem>>, vector<32x128xbf16>
      %17 = arith.extf %16 : vector<32x128xbf16> to vector<32x128xf32>
      %18 = arith.addf %15, %17 : vector<32x128xf32>
      %19 = arith.truncf %18 : vector<32x128xf32> to vector<32x128xbf16>
      %c0_16 = arith.constant 0 : index
      %c0_17 = arith.constant 0 : index
      %20 = vector.load %arg7[%c0_16, %c0_17] : memref<32x128xbf16, #tpu.memory_space<vmem>>, vector<32x128xbf16>
      tpu.vector_store %arg7[%c0_16, %c0_17], %19 {strides = array<i32>} : memref<32x128xbf16, #tpu.memory_space<vmem>>, vector<32x128xbf16>,
    } else {
    }
    return
  }
  func.func @transform_0(%arg0: i32, %arg1: i32, %arg2: i32) -> (i32, i32) {
    %c0_i32 = arith.constant 0 : i32
    %c0_i32_0 = arith.constant 0 : i32
    return %arg0, %c0_i32 : i32, i32
  }
  func.func @transform_1(%arg0: i32, %arg1: i32, %arg2: i32) -> (i32, i32) {
    %c0_i32 = arith.constant 0 : i32
    return %arg2, %arg1 : i32, i32
  }
  func.func @transform_2(%arg0: i32, %arg1: i32, %arg2: i32) -> (i32, i32) {
    %c0_i32 = arith.constant 0 : i32
    %c0_i32_0 = arith.constant 0 : i32
    return %arg0, %c0_i32 : i32, i32
  }
  func.func @transform_3(%arg0: i32, %arg1: i32, %arg2: i32) -> (i32, i32) {
    %c0_i32 = arith.constant 0 : i32
    return %arg0, %arg1 : i32, i32
  }
  func.func @transform_4(%arg0: i32, %arg1: i32, %arg2: i32) -> (i32, i32) {
    %c0_i32 = arith.constant 0 : i32
    return %arg0, %arg1 : i32, i32
  }
}

</mosaic_0001>

<bundles_post_ra>
// kernel: _lambda_.6
= control target key start
LH: loop header
LB: loop body
LE: loop exit
PB: predicated region body
PF: predicated region fallthrough
CT: control target
= control target key end

     0   :  { %s865_s12 = smov 0   ;;  %s867_s13 = smov 0   ;;  %s1110_s0 = inlined_call_operand.vmem [shape: bf16[16,32], index: 0, kind: input, shape index: {}]   ;;  %s1111_s1 = inlined_call_operand.vmem [shape: bf16[32,512], index: 1, kind: input, shape index: {}]   ;;  %s1112_s2 = inlined_call_operand.vmem [shape: f32[16,1], index: 2, kind: input, shape index: {}]   ;;  %s1113_s3 = inlined_call_operand.vmem [shape: bf16[16,512], index: 3, kind: output, shape index: {}]  }
   0x1   :  { %s869_s14 = smov 0   ;;  %s871_s15 = smov 0  }
   0x2   :  { %s873_s16 = smov 0  }
   0x3 LB: > { %s28_s17 = sadd.s32 1, %s838_s15  ;;  %s704_s18 = sadd.s32 4294967295, %s842_s16   ;;  %s842_s16 = sphi %s873_s16, %s13_s16   ;;  %s838_s15 = sphi %s871_s15, %s1138_s15   ;;  %s834_s14 = sphi %s869_s14, %s1137_s14   ;;  %s830_s13 = sphi %s867_s13, %s1136_s13   ;;  %s826_s12 = sphi %s865_s12, %s1135_s12  }
   0x4   : > { %p30_p0 = scmp.ge.s32.totalorder %s28_s17, 2  ;;  %p74_p1 = scmp.ne.s32.totalorder %s830_s13, %s826_s12 }
   0x5   : > { %p75_p2 = scmp.eq.s32.totalorder %s842_s16, 0  ;;  %p132_p4 = scmp.eq.s32.totalorder %s704_s18, 1 }
   0x6   : > { %s1140_s17 = smov (%p30_p0, %s28_s17), 0  ;;  %s67_s20 = sadd.s32 1, %s830_s13 }
   0x7   : > { %p76_p3 = por %p75_p2, %p74_p1  ;;  %s63_s19 = ssub.s32 %s838_s15, %s1140_s17 }
   0x8   : > { %p65_p5 = scmp.eq.s32.totalorder %s63_s19, 0  ;;  %p900_p6 = por %p132_p4, %p74_p1 }
   0x9   : > { %p709_p7 = scmp.ge.s32.totalorder %s842_s16, 2 }
   0xa   : > { %s905_s22 = scalar_select %p65_p5, %s830_s13, %s67_s20  }
   0xb   : > { %172 = sbr.rel (%p709_p7) target bundleno = 24 (0x18), region = 24 }
  0x10   : > { %175 = sbr.rel (!%p76_p3) target bundleno = 24 (0x18), region = 28  ;;  %s177_s23 = sand.u32 (%p76_p3), 1, %s830_s13  }
  0x11   : > { %s727_s24 = sshll.u32 (%p76_p3), %s838_s15, 3  ;;  %s710_s25 = sshll.u32 (%p76_p3), %s177_s23, 5 }
  0x12   : > { %s185_s28 = scalar_lea.vmem (%p76_p3), %s1111_s1, %s727_s24  ;;  %s179_s29 = scalar_lea.vmem (%p76_p3), [#allocation3], %s710_s25 }
  0x13   : > { %v220_v0 = vld [vmem:[%s185_s28] sm:$0xff] (%p76_p3)  ;;  %v222_v1 = vld [vmem:[%s185_s28 + $0x10] sm:$0xff] (%p76_p3) }
  0x14   : > { %v224_v2 = vld [vmem:[%s185_s28 + $0x20] sm:$0xff] (%p76_p3)  ;;  %221 = vst [vmem:[%s179_s29] sm:$0xff] (%p76_p3), %v220_v0  ;;  %v226_v3 = vld [vmem:[%s185_s28 + $0x30] sm:$0xff] (%p76_p3) }
  0x15   : > { %223 = vst [vmem:[%s179_s29 + $0x8] sm:$0xff] %v222_v1 }
  0x16   : > { %225 = vst [vmem:[%s179_s29 + $0x10] sm:$0xff] %v224_v2 }
  0x17   : > { %227 = vst [vmem:[%s179_s29 + $0x18] sm:$0xff] %v226_v3 }
  0x18 PF: > { %p713_p8 = scmp.ge.s32.totalorder %s842_s16, 1  ;;  %p232_p9 = scmp.lt.s32.totalorder %s842_s16, 3 }
  0x1a   : > { %p233_p10 = pnand %p713_p8, %p232_p9 }
  0x1b   : > { %s239_s30 = sand.u32 (!%p233_p10), 1, %s826_s12  }
  0x1c   : > { %236 = sbr.rel (%p233_p10) target bundleno = 242 (0xf2), region = 66  ;;  %s714_s4 = sshll.u32 (!%p233_p10), %s239_s30, 5 }
  0x1d   : > { %s241_s5 = scalar_lea.vmem (!%p233_p10), [#allocation3], %s714_s4  ;;  %s715_s18 = sshll.u32 (!%p233_p10), %s239_s30, 4 }
  0x1e   : > { %s270_s19 = scalar_lea.vmem (!%p233_p10), [#allocation4], %s715_s18 }
  0x21   : > { %v918_v4 = vld [vmem:[%s241_s5 + $0x10] sm:$0xff]  ;;  %v920_v5 = vld [vmem:[%s241_s5 + $0x18] sm:$0xff]  ;;  %v922_v6 = vld [vmem:[%s241_s5] sm:$0xff]  ;;  %s729_s20 = sshll.u32 (%p900_p6), %s834_s14, 3 }
  0x22   : > { %v306_v7 = vunpack.c.l.bf16 %v918_v4  ;;  %v308_v8 = vunpack.c.l.bf16 %v920_v5  ;;  %v307_v9 = vunpack.c.h.bf16 %v918_v4  ;;  %v309_v10 = vunpack.c.h.bf16 %v920_v5  ;;  %v928_v11 = vld [vmem:[%s241_s5 + $0x8] sm:$0xff]  ;;  %s562_s24 = scalar_lea.vmem (%p900_p6), %s1113_s3, %s729_s20 }
  0x23   : > { %v302_v12 = vunpack.c.l.bf16 %v922_v6  ;;  %v304_v13 = vunpack.c.l.bf16 %v928_v11  ;;  %v303_v24 = vunpack.c.h.bf16 %v922_v6  ;;  %v305_v26 = vunpack.c.h.bf16 %v928_v11 }
  0x24   : > { %v314_v14 = vsub.f32 0.0, %v306_v7  ;;  %v316_v15 = vsub.f32 0.0, %v308_v8  ;;  %v315_v16 = vsub.f32 0.0, %v307_v9  ;;  %v317_v17 = vsub.f32 0.0, %v309_v10 }
  0x25   : > { %v310_v18 = vsub.f32 0.0, %v302_v12  ;;  %v312_v19 = vsub.f32 0.0, %v304_v13  ;;  %v311_v28 = vsub.f32 0.0, %v303_v24  ;;  %v313_v29 = vsub.f32 0.0, %v305_v26 }
  0x26   : > { %v326_v20 = vmul.f32 1.442695, %v314_v14  ;;  %v330_v21 = vmul.f32 1.442695, %v316_v15  ;;  %v328_v22 = vmul.f32 1.442695, %v315_v16 }
  0x27   : > { %v332_v23 = vmul.f32 1.442695, %v317_v17  ;;  %v318_v25 = vmul.f32 1.442695, %v310_v18  ;;  %v322_v27 = vmul.f32 1.442695, %v312_v19 }
  0x28   : > { %772 = vpow2.f32 %v326_v20  ;;  %v320_v33 = vmul.f32 1.442695, %v311_v28  ;;  %v324_v36 = vmul.f32 1.442695, %v313_v29 }
  0x29   : > { %774 = vpow2.f32 %v330_v21 }
  0x2a   : > { %776 = vpow2.f32 %v328_v22 }
  0x2b   : > { %778 = vpow2.f32 %v332_v23 }
  0x2c   : > { %780 = vpow2.f32 %v318_v25 }
  0x2d   : > { %782 = vpow2.f32 %v322_v27 }
  0x2e   : > { %v773_v30 = vpop.eup %772 }
  0x2f   : > { %v775_v31 = vpop.eup %774  ;;  %v338_v32 = vadd.f32 1.0, %v773_v30 }
  0x30   : > { %v777_v34 = vpop.eup %776  ;;  %v950_v35 = vadd.f32 1.0, %v775_v31  ;;  %v531_v31 = vld [vmem:[%s1112_s2 + $0x8] sm:$0xff] }
  0x31   : > { %v779_v37 = vpop.eup %778  ;;  %784 = vrcp.f32 %v338_v32  ;;  %v411_v39 = vand.u32 2147483647, %v338_v32  ;;  %v413_v40 = vand.u32 2147483648, %v338_v32  ;;  %v954_v43 = vadd.f32 1.0, %v777_v34 }
  0x32   : > { %v781_v38 = vpop.eup %780  ;;  %786 = vrcp.f32 %v950_v35  ;;  %v441_v42 = vand.u32 2147483647, %v950_v35  ;;  %v956_v44 = vadd.f32 1.0, %v779_v37  ;;  %v443_v45 = vand.u32 2147483648, %v950_v35 }
  0x33   : > { %v783_v41 = vpop.eup %782  ;;  %788 = vpow2.f32 %v320_v33  ;;  %v959_v46 = vadd.f32 1.0, %v781_v38  ;;  %vm407_vm0 = vweird.f32 %v338_v32  ;;  %vm437_vm1 = vweird.f32 %v950_v35 }
  0x34   : > { %790 = vpow2.f32 %v324_v36  ;;  %v428_v47 = vand.u32 2147483648, %v954_v43  ;;  %vm964_vm2 = vcmp.eq.f32.partialorder %v411_v39, 8.507059e+37  ;;  %v414_v49 = vor.u32 1.1754944e-38, %v413_v40 }
  0x35   : > { %792 = vrcp.f32 %v954_v43  ;;  %v426_v50 = vand.u32 2147483647, %v954_v43  ;;  %v970_v51 = vadd.f32 1.0, %v783_v41  ;;  %vm972_vm3 = vcmp.eq.f32.partialorder %v441_v42, 8.507059e+37 }
  0x36   : > { %794 = vrcp.f32 %v956_v44  ;;  %v456_v54 = vand.u32 2147483647, %v956_v44  ;;  %v458_v55 = vand.u32 2147483648, %v956_v44  ;;  %v444_v58 = vor.u32 1.1754944e-38, %v443_v45 }
  0x37   : > { %v785_v52 = vpop.eup %784  ;;  %796 = vrcp.f32 %v959_v46  ;;  %vm422_vm4 = vweird.f32 %v954_v43  ;;  %vm452_vm5 = vweird.f32 %v956_v44  ;;  %v429_v61 = vor.u32 1.1754944e-38, %v428_v47 }
  0x38   : > { %v787_v56 = vpop.eup %786  ;;  %v403_v57 = vmul.f32 %v785_v52, %v338_v32  ;;  %v351_v62 = vand.u32 2147483647, %v959_v46  ;;  %v353_v63 = vand.u32 2147483648, %v959_v46  ;;  %vm408_vm6 = vweird.f32 %v785_v52 }
  0x39   : > { %v789_v59 = vpop.eup %788  ;;  %v433_v60 = vmul.f32 %v787_v56, %v950_v35  ;;  %vm984_vm7 = vcmp.eq.f32.partialorder %v426_v50, 8.507059e+37  ;;  %vm347_vm8 = vweird.f32 %v959_v46  ;;  %798 = vrcp.f32 %v970_v51  ;;  %vm1003_vm13 = vmor %vm407_vm0, %vm408_vm6 }
  0x3a   : > { %v791_v0 = vpop.eup %790  ;;  %v404_v1 = vsub.f32 1.0, %v403_v57  ;;  %vm438_vm9 = vweird.f32 %v787_v56  ;;  %vm990_vm10 = vcmp.eq.f32.partialorder %v456_v54, 8.507059e+37  ;;  %v459_v16 = vor.u32 1.1754944e-38, %v458_v55 }
  0x3b   : > { %v793_v3 = vpop.eup %792  ;;  %v434_v14 = vsub.f32 1.0, %v433_v60  ;;  %vm377_vm11 = vweird.f32 %v970_v51  ;;  %vm996_vm12 = vcmp.eq.f32.partialorder %v351_v62, 8.507059e+37  ;;  %v381_v21 = vand.u32 2147483647, %v970_v51  ;;  %vm1012_vm14 = vmor %vm437_vm1, %vm438_vm9 }
  0x3c   : > { %v795_v17 = vpop.eup %794  ;;  %v405_v18 = vmul.f32 %v785_v52, %v404_v1  ;;  %v418_v19 = vmul.f32 %v793_v3, %v954_v43  ;;  %v354_v28 = vor.u32 1.1754944e-38, %v353_v63  ;;  %v383_v29 = vand.u32 2147483648, %v970_v51 }
  0x3d   : > { %v797_v22 = vpop.eup %796  ;;  %v435_v25 = vmul.f32 %v787_v56, %v434_v14  ;;  %v448_v27 = vmul.f32 %v795_v17, %v956_v44  ;;  %vm423_vm15 = vweird.f32 %v793_v3  ;;  %vm453_vm0 = vweird.f32 %v795_v17 }
  0x3e   : > { %v406_v30 = vadd.f32 %v785_v52, %v405_v18  ;;  %v419_v33 = vsub.f32 1.0, %v418_v19  ;;  %v343_v32 = vmul.f32 %v797_v22, %v959_v46  ;;  %vm348_vm6 = vweird.f32 %v797_v22  ;;  %vm1025_vm1 = vmor %vm422_vm4, %vm423_vm15 }
  0x3f   : > { %v436_v34 = vadd.f32 %v787_v56, %v435_v25  ;;  %v449_v36 = vsub.f32 1.0, %v448_v27  ;;  %v799_v37 = vpop.eup %798  ;;  %v335_v41 = vadd.f32 1.0, %v789_v59 }
  0x40   : > { %v410_v38 = vsel %vm1003_vm13, %v785_v52, %v406_v30  ;;  %v420_v39 = vmul.f32 %v793_v3, %v419_v33  ;;  %v344_v40 = vsub.f32 1.0, %v343_v32  ;;  %v373_v50 = vmul.f32 %v799_v37, %v970_v51  ;;  %v530_v51 = vld [vmem:[%s1112_s2] sm:$0xff] }
  0x41   : > { %v415_v35 = vsel %vm964_vm2, %v414_v49, %v410_v38  ;;  %v440_v42 = vsel %vm1012_vm14, %v787_v56, %v436_v34  ;;  %v450_v47 = vmul.f32 %v795_v17, %v449_v36  ;;  %vm1037_vm2 = vmor %vm452_vm5, %vm453_vm0  ;;  %vm378_vm4 = vweird.f32 %v799_v37 }
  0x42   : > { %v445_v52 = vsel %vm972_vm3, %v444_v58, %v440_v42  ;;  %v466_v54 = vmul.f32 %v415_v35, %v306_v7  ;;  %v421_v48 = vadd.f32 %v793_v3, %v420_v39  ;;  %v345_v43 = vmul.f32 %v797_v22, %v344_v40  ;;  %vm1046_vm3 = vmor %vm347_vm8, %vm348_vm6 }
  0x43   : > { %v468_v55 = vmul.f32 %v445_v52, %v308_v8  ;;  %v451_v56 = vadd.f32 %v795_v17, %v450_v47  ;;  %v374_v7 = vsub.f32 1.0, %v373_v50  ;;  %v337_v58 = vadd.f32 1.0, %v791_v0  ;;  %vm379_vm5 = vmor %vm377_vm11, %vm378_vm4 }
  0x44   : > { %v425_v44 = vsel %vm1025_vm1, %v793_v3, %v421_v48  ;;  %v346_v57 = vadd.f32 %v797_v22, %v345_v43  ;;  %800 = vrcp.f32 %v335_v41  ;;  %v384_v0 = vor.u32 1.1754944e-38, %v383_v29 }
  0x45   : > { %v472_v59 = vpack.c.bf16 %v468_v55, %v466_v54  ;;  %v430_v8 = vsel %vm984_vm7, %v429_v61, %v425_v44  ;;  %v455_v60 = vsel %vm1037_vm2, %v795_v17, %v451_v56  ;;  %v375_v46 = vmul.f32 %v799_v37, %v374_v7 }
  0x46   : > { %v460_v62 = vsel %vm990_vm10, %v459_v16, %v455_v60  ;;  %v467_v63 = vmul.f32 %v430_v8, %v307_v9  ;;  %v350_v1 = vsel %vm1046_vm3, %v797_v22, %v346_v57  ;;  %vm382_vm7 = vcmp.eq.f32.partialorder %v381_v21, 8.507059e+37  ;;  %v728_v22 = vld [vmem:[%s1110_s0] sm:$0xff] }
  0x47   : > { %493 = vmatpush.bf16.msra.mxu0 %v472_v59  ;;  %v469_v61 = vmul.f32 %v460_v62, %v309_v10  ;;  %v355_v2 = vsel %vm996_vm12, %v354_v28, %v350_v1  ;;  %v376_v3 = vadd.f32 %v799_v37, %v375_v46  ;;  %802 = vrcp.f32 %v337_v58 }
  0x48   : > { %v462_v9 = vmul.f32 %v355_v2, %v302_v12  ;;  %v844_v17 = vmov 0   ;;  %v366_v18 = vand.u32 2147483647, %v335_v41  ;;  %v368_v19 = vand.u32 2147483648, %v335_v41 }
  0x49   : > { %v473_v14 = vpack.c.bf16 %v469_v61, %v467_v63  ;;  %v380_v4 = vsel %vm379_vm5, %v799_v37, %v376_v3  ;;  %771 = vset.pattern.permute.xlu0 %v844_v17  ;;  %vm362_vm8 = vweird.f32 %v335_v41  ;;  %vm483_vm10 = vcmask 261120  }
  0x4a   : > { %v801_v15 = vpop.eup %800  ;;  %v385_v16 = vsel %vm382_vm7, %v384_v0, %v380_v4  ;;  %534 = vperm.xlu0 %771, %v530_v51   ;;  %vm367_vm12 = vcmp.eq.f32.partialorder %v366_v18, 8.507059e+37  ;;  %vm392_vm13 = vweird.f32 %v337_v58  ;;  %v398_v27 = vand.u32 2147483648, %v337_v58 }
  0x4b   : > { %507 = vmatpush.bf16.msra.mxu1 %v473_v14  ;;  %v464_v5 = vmul.f32 %v385_v16, %v304_v13  ;;  %v358_v10 = vmul.f32 %v801_v15, %v335_v41  ;;  %vm363_vm9 = vweird.f32 %v801_v15  ;;  %v369_v13 = vor.u32 1.1754944e-38, %v368_v19 }
  0x4c   : > { %vm364_vm11 = vmor %vm362_vm8, %vm363_vm9  ;;  %v396_v30 = vand.u32 2147483647, %v337_v58  ;;  %v399_v36 = vor.u32 1.1754944e-38, %v398_v27 }
  0x4d   : > { %v470_v20 = vpack.c.bf16 %v464_v5, %v462_v9  ;;  %v359_v21 = vsub.f32 1.0, %v358_v10  ;;  %v803_v12 = vpop.eup %802 }
  0x4e   : > { %v388_v25 = vmul.f32 %v803_v12, %v337_v58  ;;  %vm393_vm14 = vweird.f32 %v803_v12  ;;  %vm397_vm0 = vcmp.eq.f32.partialorder %v396_v30, 8.507059e+37 }
  0x4f   : > { %494 = vmatpush.bf16.msra.mxu0 %v470_v20  ;;  %v360_v23 = vmul.f32 %v801_v15, %v359_v21  ;;  %vm394_vm15 = vmor %vm392_vm13, %vm393_vm14 }
  0x50   : > { %v389_v29 = vsub.f32 1.0, %v388_v25 }
  0x51   : > { %v361_v28 = vadd.f32 %v801_v15, %v360_v23 }
  0x52   : > { %720 = vmatmul.msk.bf16.vlgmr.msra.gmra.mxu0 %vm483_vm10, %v728_v22  ;;  %v390_v32 = vmul.f32 %v803_v12, %v389_v29  ;;  %539 = vperm.xlu0 %771, %v531_v31  }
  0x53   : > { %v365_v33 = vsel %vm364_vm11, %v801_v15, %v361_v28 }
  0x54   : > { %v370_v34 = vsel %vm367_vm12, %v369_v13, %v365_v33  ;;  %v391_v37 = vadd.f32 %v803_v12, %v390_v32 }
  0x55   : > { %v463_v39 = vmul.f32 %v370_v34, %v303_v24 }
  0x56   : > { %v395_v38 = vsel %vm394_vm15, %v803_v12, %v391_v37 }
  0x57   : > { %v400_v40 = vsel %vm397_vm0, %v399_v36, %v395_v38 }
  0x58   : > { %v465_v41 = vmul.f32 %v400_v40, %v305_v26 }
  0x5a   : > { %v471_v35 = vpack.c.bf16 %v465_v41, %v463_v39 }
  0x5c   : > { %508 = vmatpush.bf16.msra.mxu1 %v471_v35 }
  0x5f   : > { %721 = vmatmul.msk.bf16.vlgmr.msra.gmra.mxu1 %vm483_vm10, %v728_v22 }
  0xbc   : > { %v535_v45 = vpop.permute.xlu0 %534 }
  0xc4   : > { %v540_v6 = vpop.permute.xlu0 %539 }
  0xcf   : > { %v496_v42 = vpop.f32.mrf.mxu0 }
  0xd0   : > { %v542_v47 = vadd.f32 %v535_v45, %v496_v42 }
  0xd7   : > { %v498_v48 = vpop.f32.mrf.mxu0 }
  0xd8   : > { %v544_v24 = vadd.f32 %v540_v6, %v498_v48 }
  0xdc   : > { %v510_v50 = vpop.f32.mrf.mxu1 }
  0xdd   : > { %v543_v52 = vadd.f32 %v535_v45, %v510_v50 }
  0xdf   : > { %v546_v54 = vpack.c.bf16 %v543_v52, %v542_v47 }
  0xe1   : > { %548 = vst [vmem:[%s270_s19] sm:$0xff] %v546_v54 }
  0xe4   : > { %v512_v49 = vpop.f32.mrf.mxu1 }
  0xe5   : > { %v545_v11 = vadd.f32 %v540_v6, %v512_v49  ;;  %556 = sbr.rel (!%p900_p6) target bundleno = 242 (0xf2), region = 82 }
  0xe7   : > { %v547_v26 = vpack.c.bf16 %v545_v11, %v544_v24 }
  0xe8   : > { %v593_v43 = vld [vmem:[%s270_s19] sm:$0xff] (%p900_p6) }
  0xe9   : > { %549 = vst [vmem:[%s270_s19 + $0x8] sm:$0xff] %v547_v26 }
  0xea   : > { %594 = vst [vmem:[%s562_s24] sm:$0xff] %v593_v43 }
  0xf0   : > { %v595_v55 = vld [vmem:[%s270_s19 + $0x8] sm:$0xff] }
  0xf1   : > { %596 = vst [vmem:[%s562_s24 + $0x10] sm:$0xff] %v595_v55 }
  0xf2 PF: > { %s13_s16 = sadd.s32 1, %s842_s16   ;;  %s1135_s12 = smov %s830_s13 }
  0xf3   : > { %p10_p11 = scmp.ge.s32.totalorder %s13_s16, 4   ;;  %s1136_s13 = smov %s905_s22 }
  0xf4   : > { %s1137_s14 = smov %s838_s15  ;;  %s1138_s15 = smov %s1140_s17 }
  0xf5   :  { %12 = sbr.rel (!%p10_p11) target bundleno = 3 (0x3), region = 157 }

// kernel: _lambda_.7
= control target key start
LH: loop header
LB: loop body
LE: loop exit
PB: predicated region body
PF: predicated region fallthrough
CT: control target
= control target key end

     0   :  { %vm273_vm0 = vcmask 130048   ;;  %v592_v24 = vmov 0   ;;  %s756_s1 = inlined_call_operand.vmem [shape: bf16[400,128], index: 1, kind: input, shape index: {}]   ;;  %s757_s0 = inlined_call_operand.vmem [shape: bf16[32,400], index: 0, kind: input, shape index: {}]   ;;  %s758_s2 = inlined_call_operand.vmem [shape: f32[32,1], index: 2, kind: input, shape index: {}]   ;;  %s759_s3 = inlined_call_operand.vmem [shape: bf16[32,128], index: 3, kind: output, shape index: {}]  }
   0x1   :  { %v560_v0 = vld [vmem:[%s756_s1 + $0x38] sm:$0xff]  ;;  %v559_v3 = vld [vmem:[%s756_s1 + $0x30] sm:$0xff]  ;;  %v558_v6 = vld [vmem:[%s756_s1 + $0x28] sm:$0xff]  ;;  %590 = vset.pattern.permute.xlu0 %v592_v24  ;;  %591 = vset.pattern.permute.xlu1 %v592_v24 }
   0x2   :  { %v568_v1 = vld [vmem:[%s756_s1 + $0x78] sm:$0xff]  ;;  %280 = vmatpush.bf16.msra.mxu0 %v560_v0  ;;  %v567_v4 = vld [vmem:[%s756_s1 + $0x70] sm:$0xff]  ;;  %v566_v7 = vld [vmem:[%s756_s1 + $0x68] sm:$0xff] }
   0x3   :  { %v576_v2 = vld [vmem:[%s756_s1 + $0xb8] sm:$0xff]  ;;  %299 = vmatpush.bf16.msra.mxu1 %v568_v1  ;;  %v575_v5 = vld [vmem:[%s756_s1 + $0xb0] sm:$0xff]  ;;  %v577_v8 = vld [vmem:[%s756_s1 + $0xc0] sm:$0xff] }
   0x4   :  { %318 = vmatpush.bf16.msra.mxu2 %v576_v2  ;;  %v574_v9 = vld [vmem:[%s756_s1 + $0xa8] sm:$0xff]  ;;  %v423_v11 = vld [vmem:[%s757_s0 + $0x18] sm:$0xf0]  ;;  %344 = vmatpush.bf16.msra.mxu3 %v577_v8  ;;  %v557_v13 = vld [vmem:[%s756_s1 + $0x20] sm:$0xff] }
   0x5   :  { %v546_v10 = vld [vmem:[%s757_s0 + $0xc] sm:$0xf]  ;;  %v565_v14 = vld [vmem:[%s756_s1 + $0x60] sm:$0xff]  ;;  %v556_v16 = vld [vmem:[%s756_s1 + $0x18] sm:$0xff] }
   0x6   :  { %281 = vmatpush.bf16.msra.mxu0 %v559_v3  ;;  %v426_v12 = vor.u32 %v546_v10, %v423_v11  ;;  %v573_v15 = vld [vmem:[%s756_s1 + $0xa0] sm:$0xff]  ;;  %v564_v17 = vld [vmem:[%s756_s1 + $0x58] sm:$0xff]  ;;  %v555_v19 = vld [vmem:[%s756_s1 + $0x10] sm:$0xff] }
   0x7   :  { %300 = vmatpush.bf16.msra.mxu1 %v567_v4  ;;  %v572_v18 = vld [vmem:[%s756_s1 + $0x98] sm:$0xff]  ;;  %v563_v20 = vld [vmem:[%s756_s1 + $0x50] sm:$0xff]  ;;  %v371_v21 = vld [vmem:[%s758_s2] sm:$0xff] }
   0x8   :  { %319 = vmatpush.bf16.msra.mxu2 %v575_v5  ;;  %543 = vmatmul.msk.bf16.vlgmr.msra.gmra.mxu3 %vm273_vm0, %v426_v12  ;;  %v373_v22 = vld [vmem:[%s758_s2 + $0x10] sm:$0xff]  ;;  %v550_v25 = vld [vmem:[%s757_s0 + $0x2c] sm:$0xf]  ;;  %v439_v26 = vld [vmem:[%s757_s0 + $0x38] sm:$0xf0] }
   0x9   :  { %v571_v23 = vld [vmem:[%s756_s1 + $0x90] sm:$0xff]  ;;  %377 = vperm.xlu0 %590, %v371_v21   ;;  %387 = vperm.xlu1 %591, %v373_v22   ;;  %v554_v27 = vld [vmem:[%s756_s1 + $0x8] sm:$0xff]  ;;  %v442_v30 = vor.u32 %v550_v25, %v439_v26  ;;  %v553_v31 = vld [vmem:[%s756_s1] sm:$0xff] }
   0xa   :  { %282 = vmatpush.bf16.msra.mxu0 %v558_v6  ;;  %v562_v28 = vld [vmem:[%s756_s1 + $0x48] sm:$0xff]  ;;  %v561_v32 = vld [vmem:[%s756_s1 + $0x40] sm:$0xff]  ;;  %v547_v34 = vld [vmem:[%s757_s0 + $0xc] sm:$0xf0] }
   0xb   :  { %301 = vmatpush.bf16.msra.mxu1 %v566_v7  ;;  %v570_v29 = vld [vmem:[%s756_s1 + $0x88] sm:$0xff]  ;;  %v413_v33 = vld [vmem:[%s757_s0] sm:$0xf]  ;;  %v545_v36 = vld [vmem:[%s757_s0 + $0x4] sm:$0xf] }
   0xc   :  { %320 = vmatpush.bf16.msra.mxu2 %v574_v9  ;;  %v372_v35 = vld [vmem:[%s758_s2 + $0x8] sm:$0xff]  ;;  %v415_v37 = vld [vmem:[%s757_s0 + $0x10] sm:$0xf0]  ;;  %v374_v38 = vld [vmem:[%s758_s2 + $0x18] sm:$0xff]  ;;  %v414_v42 = vor.u32 %v547_v34, %v413_v33 }
   0xd   :  { %v569_v39 = vld [vmem:[%s756_s1 + $0x80] sm:$0xff]  ;;  %v421_v40 = vld [vmem:[%s757_s0 + $0x8] sm:$0xf]  ;;  %v548_v41 = vld [vmem:[%s757_s0 + $0x14] sm:$0xf0]  ;;  %v418_v43 = vor.u32 %v545_v36, %v415_v37 }
   0xe   :  { %283 = vmatpush.bf16.msra.mxu0 %v557_v13  ;;  %v422_v44 = vor.u32 %v548_v41, %v421_v40  ;;  %v429_v45 = vld [vmem:[%s757_s0 + $0x20] sm:$0xf]  ;;  %v551_v46 = vld [vmem:[%s757_s0 + $0x2c] sm:$0xf0]  ;;  %v549_v47 = vld [vmem:[%s757_s0 + $0x24] sm:$0xf] }
   0xf   :  { %302 = vmatpush.bf16.msra.mxu1 %v565_v14  ;;  %v431_v48 = vld [vmem:[%s757_s0 + $0x30] sm:$0xf0]  ;;  %v437_v49 = vld [vmem:[%s757_s0 + $0x28] sm:$0xf]  ;;  %v552_v50 = vld [vmem:[%s757_s0 + $0x34] sm:$0xf0]  ;;  %v430_v51 = vor.u32 %v551_v46, %v429_v45 }
  0x10   :  { %321 = vmatpush.bf16.msra.mxu2 %v573_v15  ;;  %v434_v52 = vor.u32 %v549_v47, %v431_v48  ;;  %v438_v53 = vor.u32 %v552_v50, %v437_v49 }
  0x11   :  { %382 = vperm.xlu0 %590, %v372_v35   ;;  %392 = vperm.xlu1 %591, %v374_v38  }
  0x12   :  { %284 = vmatpush.bf16.msra.mxu0 %v556_v16 }
  0x13   :  { %303 = vmatpush.bf16.msra.mxu1 %v564_v17 }
  0x14   :  { %322 = vmatpush.bf16.msra.mxu2 %v572_v18 }
  0x16   :  { %285 = vmatpush.bf16.msra.mxu0 %v555_v19 }
  0x17   :  { %304 = vmatpush.bf16.msra.mxu1 %v563_v20 }
  0x18   :  { %323 = vmatpush.bf16.msra.mxu2 %v571_v23  ;;  %544 = vmatmul.msk.bf16.gmra.mxu3 %vm273_vm0, %v442_v30 }
  0x1a   :  { %286 = vmatpush.bf16.msra.mxu0 %v554_v27 }
  0x1b   :  { %305 = vmatpush.bf16.msra.mxu1 %v562_v28 }
  0x1c   :  { %324 = vmatpush.bf16.msra.mxu2 %v570_v29 }
  0x1e   :  { %287 = vmatpush.bf16.msra.mxu0 %v553_v31 }
  0x1f   :  { %306 = vmatpush.bf16.msra.mxu1 %v561_v32 }
  0x20   :  { %325 = vmatpush.bf16.msra.mxu2 %v569_v39 }
  0x21   :  { %288 = vmatmul.bf16.vlgmr.msra.gmra.mxu0 %v414_v42 }
  0x22   :  { %307 = vmatmul.bf16.vlgmr.msra.gmra.mxu1 %v418_v43 }
  0x23   :  { %326 = vmatmul.bf16.vlgmr.msra.gmra.mxu2 %v422_v44 }
  0x31   :  { %293 = vmatmul.bf16.gmra.mxu0 %v430_v51 }
  0x32   :  { %312 = vmatmul.bf16.gmra.mxu1 %v434_v52 }
  0x33   :  { %331 = vmatmul.bf16.gmra.mxu2 %v438_v53 }
  0x7b   :  { %v378_v57 = vpop.permute.xlu0 %377  ;;  %v388_v14 = vpop.permute.xlu1 %387 }
  0x83   :  { %v383_v4 = vpop.permute.xlu0 %382  ;;  %v393_v24 = vpop.permute.xlu1 %392 }
  0x8b   :  { %v346_v56 = vpop.f32.mrf.mxu3 }
  0x93   :  { %v348_v63 = vpop.f32.mrf.mxu3 }
  0x9b   :  { %v351_v11 = vpop.f32.mrf.mxu3 }
  0x9e   :  { %v289_v54 = vpop.f32.mrf.mxu0 }
  0x9f   :  { %v308_v55 = vpop.f32.mrf.mxu1 }
  0xa0   :  { %v309_v59 = vadd.f32 %v308_v55, %v289_v54 }
  0xa3   :  { %v353_v22 = vpop.f32.mrf.mxu3 }
  0xa6   :  { %v327_v58 = vpop.f32.mrf.mxu2  ;;  %v291_v60 = vpop.f32.mrf.mxu0 }
  0xa7   :  { %v310_v61 = vpop.f32.mrf.mxu1  ;;  %v328_v62 = vadd.f32 %v327_v58, %v309_v59 }
  0xa8   :  { %v311_v0 = vadd.f32 %v310_v61, %v291_v60 }
  0xa9   :  { %v347_v2 = vadd.f32 %v346_v56, %v328_v62 }
  0xab   :  { %v395_v8 = vadd.f32 %v378_v57, %v347_v2 }
  0xae   :  { %v329_v1 = vpop.f32.mrf.mxu2  ;;  %v294_v5 = vpop.f32.mrf.mxu0 }
  0xaf   :  { %v330_v3 = vadd.f32 %v329_v1, %v311_v0  ;;  %v313_v6 = vpop.f32.mrf.mxu1 }
  0xb0   :  { %v314_v13 = vadd.f32 %v313_v6, %v294_v5 }
  0xb1   :  { %v349_v7 = vadd.f32 %v348_v63, %v330_v3 }
  0xb3   :  { %v396_v9 = vadd.f32 %v383_v4, %v349_v7 }
  0xb5   :  { %v581_v10 = vpack.c.bf16 %v396_v9, %v395_v8 }
  0xb6   :  { %v332_v12 = vpop.f32.mrf.mxu2  ;;  %v296_v15 = vpop.f32.mrf.mxu0 }
  0xb7   :  { %582 = vst [vmem:[%s759_s3] sm:$0xff] %v581_v10   ;;  %v315_v16 = vpop.f32.mrf.mxu1  ;;  %v333_v17 = vadd.f32 %v332_v12, %v314_v13 }
  0xb8   :  { %v316_v18 = vadd.f32 %v315_v16, %v296_v15 }
  0xb9   :  { %v352_v20 = vadd.f32 %v351_v11, %v333_v17 }
  0xbb   :  { %v397_v25 = vadd.f32 %v388_v14, %v352_v20 }
  0xbe   :  { %v334_v19 = vpop.f32.mrf.mxu2 }
  0xbf   :  { %v335_v21 = vadd.f32 %v334_v19, %v316_v18 }
  0xc1   :  { %v354_v23 = vadd.f32 %v353_v22, %v335_v21 }
  0xc3   :  { %v398_v26 = vadd.f32 %v393_v24, %v354_v23 }
  0xc5   :  { %v586_v27 = vpack.c.bf16 %v398_v26, %v397_v25 }
  0xc7   :  { %588 = vst [vmem:[%s759_s3 + $0x8] sm:$0xff] %v586_v27  }

// kernel: _lambda_.8
= control target key start
LH: loop header
LB: loop body
LE: loop exit
PB: predicated region body
PF: predicated region fallthrough
CT: control target
= control target key end

     0   :  { %s611_s12 = smov 0   ;;  %s715_s0 = inlined_call_operand.vmem [shape: bf16[8,4,2,64], index: 0, kind: input, shape index: {}]   ;;  %s716_s1 = inlined_call_operand.vmem [shape: f32[8,4,1,1], index: 1, kind: input, shape index: {}]   ;;  %s717_s2 = inlined_call_operand.vmem [shape: f32[8,4,1,1], index: 2, kind: input, shape index: {}]   ;;  %s718_s3 = inlined_call_operand.vmem [shape: bf16[8,4,2,64], index: 3, kind: output, shape index: {}]  }
   0x1 LB: > { %s525_s13 = sadd.s32 4294967295, %s586_s12   ;;  %p529_p0 = scmp.ge.s32.totalorder %s586_s12, 1  ;;  %s586_s12 = sphi %s611_s12, %s13_s12  }
   0x2   : > { %p154_p1 = scmp.lt.s32.totalorder %s586_s12, 9 }
   0x4   : > { %p155_p2 = pnand %p529_p0, %p154_p1 }
   0x5   : > { %p184_p3 = scmp.lt.s32.totalorder (!%p155_p2), %s525_s13, 7 }
   0x6   : > { %158 = sbr.rel (%p155_p2) target bundleno = 358 (0x166), region = 32 }
   0xb   : > { %v588_v0 = vmov 0   ;;  %s724_s13 = smov (!%p184_p3, %s525_s13), 7  ;;  %vm208_vm0 = vcmask 517120   ;;  %v589_v16 = vmov 64.0   ;;  %v590_v19 = vmov 4.0  }
   0xc   : > { %549 = vset.pattern.permute.xlu1 %v588_v0  ;;  %547 = vset.pattern.permute.xlu2 %v588_v0  ;;  %s619_s14 = sshll.u32 %s724_s13, 2  ;;  %558 = vrcp.f32 %v589_v16  ;;  %vm232_vm2 = vcmask 1041408   ;;  %vm443_vm7 = vcmask 516096  }
   0xd   : > { %548 = vset.pattern.permute.xlu0 %v588_v0  ;;  %s187_s17 = scalar_lea.vmem %s715_s0, %s619_s14  ;;  %s631_s20 = scalar_lea.vmem %s716_s1, %s619_s14  ;;  %560 = vrcp.f32 %v590_v19 }
   0xe   : > { %v625_v1 = vld [vmem:[%s187_s17] sm:$0x1]  ;;  %v202_v2 = vld [vmem:[%s187_s17 + $0x2] sm:$0x1]  ;;  %v634_v5 = vld [vmem:[%s187_s17 + $0x1] sm:$0x1]  ;;  %s640_s23 = scalar_lea.vmem %s717_s2, %s619_s14  ;;  %s199_s26 = scalar_lea.vmem %s718_s3, %s619_s14 }
   0xf   : > { %v204_v3 = vunpack.c.l.bf16 %v625_v1  ;;  %v206_v4 = vunpack.c.l.bf16 %v202_v2  ;;  %v203_v6 = vld [vmem:[%s187_s17 + $0x3] sm:$0x1]  ;;  %v205_v9 = vunpack.c.l.bf16 %v634_v5  ;;  %v552_v13 = vld [vmem:[%s631_s20] ss:$0 sm:$0xff]  ;;  %v550_v14 = vld [vmem:[%s631_s20 + $0x2] ss:$0 sm:$0xff] }
  0x10   : > { %v207_v10 = vunpack.c.l.bf16 %v203_v6  ;;  %308 = vperm.xlu2 %547, %v552_v13   ;;  %v551_v15 = vld [vmem:[%s640_s23 + $0x1] ss:$0 sm:$0xff]  ;;  %v553_v59 = vld [vmem:[%s640_s23 + $0x3] ss:$0 sm:$0xff]  ;;  %v555_v61 = vld [vmem:[%s640_s23] ss:$0 sm:$0xff] }
  0x11   : > { %v209_v7 = vsel %vm208_vm0, %v204_v3, 0.0  ;;  %v215_v8 = vsel %vm208_vm0, %v206_v4, 0.0  ;;  %v212_v11 = vsel %vm208_vm0, %v205_v9, 0.0  ;;  %v556_v58 = vld [vmem:[%s631_s20 + $0x1] ss:$0 sm:$0xff] }
  0x12   : > { %210 = vadd.xlane.f32.xlu0 %v209_v7  ;;  %216 = vadd.xlane.f32.xlu1 %v215_v8  ;;  %v218_v12 = vsel %vm208_vm0, %v207_v10, 0.0  ;;  %v559_v17 = vpop.eup %558  ;;  %v554_v60 = vld [vmem:[%s631_s20 + $0x3] ss:$0 sm:$0xff]  ;;  %v557_v62 = vld [vmem:[%s640_s23 + $0x2] ss:$0 sm:$0xff] }
  0x13   : > { %v222_v18 = vmul.f32 64.0, %v559_v17  ;;  %v561_v21 = vpop.eup %560  ;;  %vm226_vm1 = vweird.f32 %v559_v17 }
  0x14   : > { %v241_v23 = vmul.f32 4.0, %v561_v21  ;;  %vm245_vm3 = vweird.f32 %v561_v21 }
  0x15   : > { %v223_v20 = vsub.f32 1.0, %v222_v18 }
  0x16   : > { %v242_v27 = vsub.f32 1.0, %v241_v23 }
  0x17   : > { %v224_v22 = vmul.f32 %v559_v17, %v223_v20 }
  0x18   : > { %v243_v30 = vmul.f32 %v561_v21, %v242_v27 }
  0x19   : > { %v225_v24 = vadd.f32 %v559_v17, %v224_v22 }
  0x1a   : > { %213 = vadd.xlane.f32.xlu0 %v212_v11  ;;  %219 = vadd.xlane.f32.xlu1 %v218_v12  ;;  %v244_v38 = vadd.f32 %v561_v21, %v243_v30 }
  0x1b   : > { %v227_v28 = vsel %vm226_vm1, %v559_v17, %v225_v24 }
  0x1c   : > { %v246_v43 = vsel %vm245_vm3, %v561_v21, %v244_v38 }
  0x33   : > { %316 = vperm.xlu1 %549, %v550_v14  }
  0x3b   : > { %344 = vperm.xlu1 %549, %v551_v15  }
  0x6a   : > { %v309_v0 = vpop.permute.xlu2 %308 }
  0x85   : > { %v211_v25 = vpop.xlane.xlu0 %210  ;;  %v217_v26 = vpop.xlane.xlu1 %216 }
  0x86   : > { %v228_v29 = vmul.f32 %v227_v28, %v211_v25  ;;  %v230_v33 = vmul.f32 %v227_v28, %v217_v26 }
  0x88   : > { %v233_v36 = vsel %vm232_vm2, %v228_v29, 0.0  ;;  %v236_v40 = vsel %vm232_vm2, %v230_v33, 0.0 }
  0x8d   : > { %v214_v31 = vpop.xlane.xlu0 %213  ;;  %v220_v32 = vpop.xlane.xlu1 %219 }
  0x8e   : > { %v229_v34 = vmul.f32 %v227_v28, %v214_v31  ;;  %v231_v35 = vmul.f32 %v227_v28, %v220_v32 }
  0x90   : > { %v234_v37 = vsel %vm232_vm2, %v229_v34, 0.0  ;;  %v238_v41 = vsel %vm232_vm2, %v231_v35, 0.0 }
  0x91   : > { %v235_v39 = vadd.f32 %v234_v37, %v233_v36 }
  0x93   : > { %v237_v42 = vadd.f32 %v236_v40, %v235_v39 }
  0x95   : > { %v239_v44 = vadd.f32 %v238_v41, %v237_v42 }
  0x97   : > { %v247_v45 = vmul.f32 %v246_v43, %v239_v44 }
  0x99   : > { %v251_v46 = vsub.f32 %v207_v10, %v247_v45  ;;  %v250_v47 = vsub.f32 %v206_v4, %v247_v45  ;;  %v248_v48 = vsub.f32 %v204_v3, %v247_v45  ;;  %v249_v55 = vsub.f32 %v205_v9, %v247_v45 }
  0x9b   : > { %v255_v49 = vmul.f32 %v251_v46, %v251_v46  ;;  %v254_v50 = vmul.f32 %v250_v47, %v250_v47  ;;  %v252_v51 = vmul.f32 %v248_v48, %v248_v48  ;;  %v253_v56 = vmul.f32 %v249_v55, %v249_v55 }
  0x9d   : > { %v265_v52 = vsel %vm208_vm0, %v255_v49, 0.0  ;;  %v262_v53 = vsel %vm208_vm0, %v254_v50, 0.0  ;;  %v256_v54 = vsel %vm208_vm0, %v252_v51, 0.0  ;;  %v259_v57 = vsel %vm208_vm0, %v253_v56, 0.0 }
  0x9e   : > { %266 = vadd.xlane.f32.xlu1 %v265_v52  ;;  %263 = vadd.xlane.f32.xlu0 %v262_v53 }
  0x9f   : > { %257 = vadd.xlane.f32.xlu2 %v256_v54 }
  0xa5   : > { %v317_v63 = vpop.permute.xlu1 %316 }
  0xa7   : > { %260 = vadd.xlane.f32.xlu2 %v259_v57 }
  0xad   : > { %v345_v1 = vpop.permute.xlu1 %344 }
  0xb2   : > { %312 = vperm.xlu0 %548, %v556_v58  }
  0xb7   : > { %352 = vperm.xlu1 %549, %v553_v59  }
  0xbf   : > { %320 = vperm.xlu2 %547, %v554_v60  }
  0xc7   : > { %340 = vperm.xlu2 %547, %v555_v61  }
  0xcf   : > { %348 = vperm.xlu2 %547, %v557_v62  }
 0x111   : > { %v264_v3 = vpop.xlane.xlu0 %263  ;;  %v267_v5 = vpop.xlane.xlu1 %266 }
 0x112   : > { %v258_v2 = vpop.xlane.xlu2 %257  ;;  %v270_v7 = vmul.f32 %v264_v3, %v227_v28  ;;  %v271_v9 = vmul.f32 %v267_v5, %v227_v28 }
 0x113   : > { %v268_v4 = vmul.f32 %v258_v2, %v227_v28 }
 0x114   : > { %v275_v13 = vsel %vm232_vm2, %v270_v7, 0.0  ;;  %v277_v15 = vsel %vm232_vm2, %v271_v9, 0.0 }
 0x115   : > { %v272_v10 = vsel %vm232_vm2, %v268_v4, 0.0 }
 0x11a   : > { %v261_v6 = vpop.xlane.xlu2 %260 }
 0x11b   : > { %v269_v8 = vmul.f32 %v261_v6, %v227_v28 }
 0x11d   : > { %v273_v11 = vsel %vm232_vm2, %v269_v8, 0.0 }
 0x11e   : > { %v274_v12 = vadd.f32 %v273_v11, %v272_v10 }
 0x120   : > { %v276_v14 = vadd.f32 %v275_v13, %v274_v12 }
 0x122   : > { %v278_v16 = vadd.f32 %v277_v15, %v276_v14  ;;  %v321_v19 = vpop.permute.xlu2 %320 }
 0x124   : > { %v279_v17 = vmul.f32 %v278_v16, %v246_v43  ;;  %v313_v28 = vpop.permute.xlu0 %312 }
 0x126   : > { %v280_v18 = vadd.f32 1e-05, %v279_v17 }
 0x128   : > { %562 = vrsqrt.f32 %v280_v18  ;;  %vm287_vm5 = vweird.f32 %v280_v18 }
 0x129   : > { %v353_v37 = vpop.permute.xlu1 %352 }
 0x12a   : > { %v341_v24 = vpop.permute.xlu2 %340 }
 0x12e   : > { %v563_v20 = vpop.eup %562 }
 0x12f   : > { %v282_v21 = vmul.f32 %v563_v20, %v280_v18  ;;  %vm288_vm4 = vweird.f32 %v563_v20 }
 0x130   : > { %vm289_vm6 = vmor %vm287_vm5, %vm288_vm4 }
 0x131   : > { %v283_v22 = vmul.f32 %v563_v20, %v282_v21 }
 0x132   : > { %v349_v38 = vpop.permute.xlu2 %348 }
 0x133   : > { %v284_v23 = vmul.f32 0.5, %v283_v22 }
 0x135   : > { %v285_v25 = vsub.f32 1.5, %v284_v23 }
 0x137   : > { %v286_v26 = vmul.f32 %v563_v20, %v285_v25 }
 0x139   : > { %v290_v27 = vsel %vm289_vm6, %v563_v20, %v286_v26 }
 0x13a   : > { %v294_v29 = vmul.f32 %v290_v27, %v251_v46  ;;  %v291_v30 = vmul.f32 %v290_v27, %v248_v48  ;;  %v293_v31 = vmul.f32 %v290_v27, %v250_v47  ;;  %v292_v32 = vmul.f32 %v290_v27, %v249_v55 }
 0x13c   : > { %v326_v33 = vmul.f32 %v321_v19, %v294_v29  ;;  %v323_v34 = vmul.f32 %v309_v0, %v291_v30  ;;  %v325_v35 = vmul.f32 %v317_v63, %v293_v31  ;;  %v324_v36 = vmul.f32 %v313_v28, %v292_v32 }
 0x13e   : > { %v667_v39 = vadd.f32 %v353_v37, %v326_v33  ;;  %v669_v40 = vadd.f32 %v341_v24, %v323_v34  ;;  %v671_v41 = vadd.f32 %v349_v38, %v325_v35  ;;  %v673_v42 = vadd.f32 %v345_v1, %v324_v36 }
 0x140   : > { %v362_v43 = vsub.f32 0.0, %v667_v39  ;;  %v359_v44 = vsub.f32 0.0, %v669_v40  ;;  %v361_v45 = vsub.f32 0.0, %v671_v41  ;;  %v360_v46 = vsub.f32 0.0, %v673_v42 }
 0x142   : > { %v369_v47 = vmul.f32 1.442695, %v362_v43  ;;  %v363_v48 = vmul.f32 1.442695, %v359_v44  ;;  %v367_v49 = vmul.f32 1.442695, %v361_v45 }
 0x143   : > { %v365_v50 = vmul.f32 1.442695, %v360_v46 }
 0x144   : > { %564 = vpow2.f32 %v369_v47 }
 0x145   : > { %566 = vpow2.f32 %v363_v48 }
 0x146   : > { %568 = vpow2.f32 %v367_v49 }
 0x147   : > { %570 = vpow2.f32 %v365_v50 }
 0x14a   : > { %v565_v51 = vpop.eup %564 }
 0x14b   : > { %v567_v52 = vpop.eup %566  ;;  %v374_v53 = vadd.f32 1.0, %v565_v51 }
 0x14c   : > { %v569_v54 = vpop.eup %568  ;;  %v371_v55 = vadd.f32 1.0, %v567_v52 }
 0x14d   : > { %v571_v56 = vpop.eup %570  ;;  %572 = vrcp.f32 %v374_v53  ;;  %v373_v57 = vadd.f32 1.0, %v569_v54  ;;  %v429_v60 = vand.u32 2147483647, %v374_v53  ;;  %v431_v63 = vand.u32 2147483648, %v374_v53 }
 0x14e   : > { %574 = vrcp.f32 %v371_v55  ;;  %v679_v58 = vadd.f32 1.0, %v571_v56  ;;  %v384_v1 = vand.u32 2147483647, %v371_v55  ;;  %v386_v3 = vand.u32 2147483648, %v371_v55 }
 0x14f   : > { %576 = vrcp.f32 %v373_v57  ;;  %vm425_vm8 = vweird.f32 %v374_v53  ;;  %vm682_vm9 = vcmp.eq.f32.partialorder %v429_v60, 8.507059e+37  ;;  %vm380_vm10 = vweird.f32 %v371_v55 }
 0x150   : > { %578 = vrcp.f32 %v679_v58  ;;  %v432_v9 = vor.u32 1.1754944e-38, %v431_v63  ;;  %vm686_vm13 = vcmp.eq.f32.partialorder %v384_v1, 8.507059e+37  ;;  %v387_v15 = vor.u32 1.1754944e-38, %v386_v3 }
 0x151   : > { %v414_v17 = vand.u32 2147483647, %v373_v57  ;;  %v416_v19 = vand.u32 2147483648, %v373_v57  ;;  %v399_v21 = vand.u32 2147483647, %v679_v58  ;;  %v401_v24 = vand.u32 2147483648, %v679_v58 }
 0x152   : > { %vm410_vm2 = vweird.f32 %v373_v57  ;;  %vm395_vm4 = vweird.f32 %v679_v58 }
 0x153   : > { %v573_v59 = vpop.eup %572  ;;  %v417_v32 = vor.u32 1.1754944e-38, %v416_v19  ;;  %vm415_vm5 = vcmp.eq.f32.partialorder %v414_v17, 8.507059e+37  ;;  %v402_v36 = vor.u32 1.1754944e-38, %v401_v24 }
 0x154   : > { %v575_v61 = vpop.eup %574  ;;  %v421_v62 = vmul.f32 %v573_v59, %v374_v53  ;;  %vm426_vm11 = vweird.f32 %v573_v59 }
 0x155   : > { %v376_v0 = vmul.f32 %v575_v61, %v371_v55  ;;  %v577_v4 = vpop.eup %576  ;;  %vm381_vm12 = vweird.f32 %v575_v61  ;;  %vm427_vm14 = vmor %vm425_vm8, %vm426_vm11  ;;  %vm400_vm8 = vcmp.eq.f32.partialorder %v399_v21, 8.507059e+37 }
 0x156   : > { %v422_v2 = vsub.f32 1.0, %v421_v62  ;;  %v579_v7 = vpop.eup %578  ;;  %v406_v10 = vmul.f32 %v577_v4, %v373_v57  ;;  %vm382_vm15 = vmor %vm380_vm10, %vm381_vm12  ;;  %vm411_vm0 = vweird.f32 %v577_v4 }
 0x157   : > { %v377_v6 = vsub.f32 1.0, %v376_v0  ;;  %v391_v13 = vmul.f32 %v579_v7, %v679_v58  ;;  %vm396_vm1 = vweird.f32 %v579_v7  ;;  %vm412_vm3 = vmor %vm410_vm2, %vm411_vm0 }
 0x158   : > { %v423_v8 = vmul.f32 %v573_v59, %v422_v2  ;;  %v407_v16 = vsub.f32 1.0, %v406_v10  ;;  %vm397_vm6 = vmor %vm395_vm4, %vm396_vm1 }
 0x159   : > { %v378_v11 = vmul.f32 %v575_v61, %v377_v6  ;;  %v392_v20 = vsub.f32 1.0, %v391_v13 }
 0x15a   : > { %v424_v14 = vadd.f32 %v573_v59, %v423_v8  ;;  %v408_v23 = vmul.f32 %v577_v4, %v407_v16 }
 0x15b   : > { %v379_v18 = vadd.f32 %v575_v61, %v378_v11  ;;  %v393_v27 = vmul.f32 %v579_v7, %v392_v20 }
 0x15c   : > { %v428_v22 = vsel %vm427_vm14, %v573_v59, %v424_v14  ;;  %v409_v30 = vadd.f32 %v577_v4, %v408_v23 }
 0x15d   : > { %v433_v25 = vsel %vm682_vm9, %v432_v9, %v428_v22  ;;  %v383_v26 = vsel %vm382_vm15, %v575_v61, %v379_v18  ;;  %v394_v33 = vadd.f32 %v579_v7, %v393_v27 }
 0x15e   : > { %v438_v28 = vmul.f32 %v433_v25, %v667_v39  ;;  %v388_v29 = vsel %vm686_vm13, %v387_v15, %v383_v26  ;;  %v413_v35 = vsel %vm412_vm3, %v577_v4, %v409_v30 }
 0x15f   : > { %v435_v31 = vmul.f32 %v388_v29, %v669_v40  ;;  %v418_v38 = vsel %vm415_vm5, %v417_v32, %v413_v35  ;;  %v398_v39 = vsel %vm397_vm6, %v579_v7, %v394_v33 }
 0x160   : > { %v442_v34 = vpack.c.bf16 %v438_v28, %v438_v28  ;;  %v437_v43 = vmul.f32 %v418_v38, %v671_v41  ;;  %v403_v44 = vsel %vm400_vm8, %v402_v36, %v398_v39 }
 0x161   : > { %v439_v37 = vpack.c.bf16 %v435_v31, %v435_v31  ;;  %v436_v40 = vmul.f32 %v403_v44, %v673_v42 }
 0x162   : > { %447 = vst.msk [vmem:[%s199_s26 + $0x3] sm:$0x1] %vm443_vm7, %v442_v34  ;;  %v441_v45 = vpack.c.bf16 %v437_v43, %v437_v43 }
 0x163   : > { %444 = vst.msk [vmem:[%s199_s26] sm:$0x1] %vm443_vm7, %v439_v37  ;;  %v440_v46 = vpack.c.bf16 %v436_v40, %v436_v40 }
 0x164   : > { %446 = vst.msk [vmem:[%s199_s26 + $0x2] sm:$0x1] %vm443_vm7, %v441_v45 }
 0x165   : > { %445 = vst.msk [vmem:[%s199_s26 + $0x1] sm:$0x1] %vm443_vm7, %v440_v46 }
 0x166 PF: > { %s13_s12 = sadd.s32 1, %s586_s12  }
 0x167   : > { %p10_p4 = scmp.ge.s32.totalorder %s13_s12, 10  }
 0x169   :  { %12 = sbr.rel (!%p10_p4) target bundleno = 1 (0x1), region = 68 }

// kernel: _lambda_.9
= control target key start
LH: loop header
LB: loop body
LE: loop exit
PB: predicated region body
PF: predicated region fallthrough
CT: control target
= control target key end

     0   :  { %v472_v5 = vmov 0   ;;  %vm209_vm0 = vcmask 261120   ;;  %s603_s1 = inlined_call_operand.vmem [shape: bf16[288,128], index: 1, kind: input, shape index: {}]   ;;  %s604_s0 = inlined_call_operand.vmem [shape: bf16[32,288], index: 0, kind: input, shape index: {}]   ;;  %s605_s2 = inlined_call_operand.vmem [shape: f32[32,1], index: 2, kind: input, shape index: {}]   ;;  %s606_s3 = inlined_call_operand.vmem [shape: bf16[32,128], index: 3, kind: output, shape index: {}]  }
   0x1   :  { %v439_v0 = vld [vmem:[%s603_s1 + $0x38] sm:$0xff]  ;;  %v438_v2 = vld [vmem:[%s603_s1 + $0x30] sm:$0xff]  ;;  %v449_v4 = vld [vmem:[%s603_s1 + $0x88] sm:$0xff]  ;;  %470 = vset.pattern.permute.xlu0 %v472_v5  ;;  %471 = vset.pattern.permute.xlu1 %v472_v5 }
   0x2   :  { %v447_v1 = vld [vmem:[%s603_s1 + $0x78] sm:$0xff]  ;;  %216 = vmatpush.bf16.msra.mxu0 %v439_v0  ;;  %v446_v3 = vld [vmem:[%s603_s1 + $0x70] sm:$0xff]  ;;  %461 = vmatpush.bf16.msra.mxu3 %v439_v0  ;;  %v448_v6 = vld [vmem:[%s603_s1 + $0x80] sm:$0xff] }
   0x3   :  { %235 = vmatpush.bf16.msra.mxu1 %v447_v1  ;;  %260 = vmatpush.bf16.msra.mxu2 %v449_v4  ;;  %v338_v7 = vld [vmem:[%s604_s0 + $0x8] sm:$0xf]  ;;  %v428_v8 = vld [vmem:[%s604_s0 + $0x10] sm:$0xf0]  ;;  %v288_v12 = vld [vmem:[%s605_s2] sm:$0xff] }
   0x4   :  { %v437_v9 = vld [vmem:[%s603_s1 + $0x28] sm:$0xff]  ;;  %v339_v11 = vor.u32 %v428_v8, %v338_v7  ;;  %v436_v13 = vld [vmem:[%s603_s1 + $0x20] sm:$0xff]  ;;  %294 = vperm.xlu0 %470, %v288_v12   ;;  %v435_v15 = vld [vmem:[%s603_s1 + $0x18] sm:$0xff] }
   0x5   :  { %v445_v10 = vld [vmem:[%s603_s1 + $0x68] sm:$0xff]  ;;  %v444_v14 = vld [vmem:[%s603_s1 + $0x60] sm:$0xff]  ;;  %v443_v16 = vld [vmem:[%s603_s1 + $0x58] sm:$0xff] }
   0x6   :  { %217 = vmatpush.bf16.msra.mxu0 %v438_v2  ;;  %462 = vmatpush.bf16.msra.mxu3 %v438_v2  ;;  %v290_v17 = vld [vmem:[%s605_s2 + $0x10] sm:$0xff]  ;;  %v289_v18 = vld [vmem:[%s605_s2 + $0x8] sm:$0xff]  ;;  %v350_v21 = vld [vmem:[%s604_s0 + $0x20] sm:$0xf] }
   0x7   :  { %236 = vmatpush.bf16.msra.mxu1 %v446_v3  ;;  %261 = vmatpush.bf16.msra.mxu2 %v448_v6  ;;  %v434_v19 = vld [vmem:[%s603_s1 + $0x10] sm:$0xff]  ;;  %v431_v22 = vld [vmem:[%s604_s0 + $0x28] sm:$0xf0]  ;;  %v432_v26 = vld [vmem:[%s603_s1] sm:$0xff] }
   0x8   :  { %v442_v20 = vld [vmem:[%s603_s1 + $0x50] sm:$0xff]  ;;  %304 = vperm.xlu1 %471, %v290_v17   ;;  %v433_v23 = vld [vmem:[%s603_s1 + $0x8] sm:$0xff]  ;;  %v351_v25 = vor.u32 %v431_v22, %v350_v21  ;;  %v440_v27 = vld [vmem:[%s603_s1 + $0x40] sm:$0xff] }
   0x9   :  { %v441_v24 = vld [vmem:[%s603_s1 + $0x48] sm:$0xff]  ;;  %v330_v28 = vld [vmem:[%s604_s0] sm:$0xf]  ;;  %v291_v29 = vld [vmem:[%s605_s2 + $0x18] sm:$0xff] }
   0xa   :  { %218 = vmatpush.bf16.msra.mxu0 %v437_v9  ;;  %463 = vmatpush.bf16.msra.mxu3 %v437_v9  ;;  %v427_v30 = vld [vmem:[%s604_s0 + $0x8] sm:$0xf0]  ;;  %v426_v31 = vld [vmem:[%s604_s0 + $0x4] sm:$0xf]  ;;  %v332_v32 = vld [vmem:[%s604_s0 + $0xc] sm:$0xf0] }
   0xb   :  { %237 = vmatpush.bf16.msra.mxu1 %v445_v10  ;;  %424 = vmatmul.msk.bf16.vlgmr.msra.gmra.mxu2 %vm209_vm0, %v339_v11  ;;  %v342_v33 = vld [vmem:[%s604_s0 + $0x18] sm:$0xf]  ;;  %v430_v34 = vld [vmem:[%s604_s0 + $0x20] sm:$0xf0]  ;;  %v331_v35 = vor.u32 %v427_v30, %v330_v28  ;;  %v335_v36 = vor.u32 %v426_v31, %v332_v32  ;;  %v429_v38 = vld [vmem:[%s604_s0 + $0x1c] sm:$0xf] }
   0xc   :  { %299 = vperm.xlu0 %470, %v289_v18   ;;  %v343_v37 = vor.u32 %v430_v34, %v342_v33  ;;  %v344_v39 = vld [vmem:[%s604_s0 + $0x24] sm:$0xf0] }
   0xd   :  { %v347_v40 = vor.u32 %v429_v38, %v344_v39 }
   0xe   :  { %219 = vmatpush.bf16.msra.mxu0 %v436_v13  ;;  %464 = vmatpush.bf16.msra.mxu3 %v436_v13 }
   0xf   :  { %238 = vmatpush.bf16.msra.mxu1 %v444_v14 }
  0x10   :  { %309 = vperm.xlu1 %471, %v291_v29  }
  0x12   :  { %220 = vmatpush.bf16.msra.mxu0 %v435_v15  ;;  %465 = vmatpush.bf16.msra.mxu3 %v435_v15 }
  0x13   :  { %239 = vmatpush.bf16.msra.mxu1 %v443_v16 }
  0x16   :  { %221 = vmatpush.bf16.msra.mxu0 %v434_v19  ;;  %466 = vmatpush.bf16.msra.mxu3 %v434_v19 }
  0x17   :  { %240 = vmatpush.bf16.msra.mxu1 %v442_v20 }
  0x1a   :  { %222 = vmatpush.bf16.msra.mxu0 %v433_v23  ;;  %467 = vmatpush.bf16.msra.mxu3 %v433_v23 }
  0x1b   :  { %241 = vmatpush.bf16.msra.mxu1 %v441_v24  ;;  %425 = vmatmul.msk.bf16.gmra.mxu2 %vm209_vm0, %v351_v25 }
  0x1e   :  { %223 = vmatpush.bf16.msra.mxu0 %v432_v26  ;;  %468 = vmatpush.bf16.msra.mxu3 %v432_v26 }
  0x1f   :  { %242 = vmatpush.bf16.msra.mxu1 %v440_v27 }
  0x21   :  { %224 = vmatmul.bf16.vlgmr.msra.gmra.mxu0 %v331_v35  ;;  %229 = vmatmul.bf16.vlgmr.msra.gmra.mxu3 %v343_v37 }
  0x22   :  { %243 = vmatmul.bf16.vlgmr.msra.gmra.mxu1 %v335_v36 }
  0x32   :  { %248 = vmatmul.bf16.gmra.mxu1 %v347_v40 }
  0x76   :  { %v295_v42 = vpop.permute.xlu0 %294 }
  0x7a   :  { %v305_v59 = vpop.permute.xlu1 %304 }
  0x7e   :  { %v300_v51 = vpop.permute.xlu0 %299 }
  0x82   :  { %v310_v3 = vpop.permute.xlu1 %309 }
  0x8e   :  { %v263_v41 = vpop.f32.mrf.mxu2 }
  0x96   :  { %v265_v46 = vpop.f32.mrf.mxu2 }
  0x9e   :  { %v225_v43 = vpop.f32.mrf.mxu0  ;;  %v268_v57 = vpop.f32.mrf.mxu2 }
  0x9f   :  { %v244_v44 = vpop.f32.mrf.mxu1 }
  0xa0   :  { %v245_v45 = vadd.f32 %v244_v44, %v225_v43 }
  0xa2   :  { %v264_v49 = vadd.f32 %v263_v41, %v245_v45 }
  0xa4   :  { %v312_v53 = vadd.f32 %v295_v42, %v264_v49  ;;  %v230_v55 = vpop.f32.mrf.mxu3 }
  0xa6   :  { %v227_v47 = vpop.f32.mrf.mxu0  ;;  %v270_v1 = vpop.f32.mrf.mxu2 }
  0xa7   :  { %v246_v48 = vpop.f32.mrf.mxu1 }
  0xa8   :  { %v247_v50 = vadd.f32 %v246_v48, %v227_v47 }
  0xaa   :  { %v266_v52 = vadd.f32 %v265_v46, %v247_v50 }
  0xac   :  { %v313_v54 = vadd.f32 %v300_v51, %v266_v52  ;;  %v232_v61 = vpop.f32.mrf.mxu3 }
  0xae   :  { %v453_v56 = vpack.c.bf16 %v313_v54, %v312_v53 }
  0xaf   :  { %v249_v58 = vpop.f32.mrf.mxu1 }
  0xb0   :  { %454 = vst [vmem:[%s606_s3] sm:$0xff] %v453_v56   ;;  %v250_v60 = vadd.f32 %v249_v58, %v230_v55 }
  0xb2   :  { %v269_v63 = vadd.f32 %v268_v57, %v250_v60 }
  0xb4   :  { %v314_v4 = vadd.f32 %v305_v59, %v269_v63 }
  0xb7   :  { %v251_v62 = vpop.f32.mrf.mxu1 }
  0xb8   :  { %v252_v0 = vadd.f32 %v251_v62, %v232_v61 }
  0xba   :  { %v271_v2 = vadd.f32 %v270_v1, %v252_v0 }
  0xbc   :  { %v315_v5 = vadd.f32 %v310_v3, %v271_v2 }
  0xbe   :  { %v458_v6 = vpack.c.bf16 %v315_v5, %v314_v4 }
  0xc0   :  { %460 = vst [vmem:[%s606_s3 + $0x8] sm:$0xff] %v458_v6  }

// kernel: _lambda_.11
= control target key start
LH: loop header
LB: loop body
LE: loop exit
PB: predicated region body
PF: predicated region fallthrough
CT: control target
= control target key end

     0   :  { %v496_v5 = vmov 0   ;;  %vm212_vm0 = vcmask 261120   ;;  %s638_s1 = inlined_call_operand.vmem [shape: bf16[288,128], index: 1, kind: input, shape index: {}]   ;;  %s639_s0 = inlined_call_operand.vmem [shape: bf16[32,288], index: 0, kind: input, shape index: {}]   ;;  %s640_s2 = inlined_call_operand.vmem [shape: f32[32,1], index: 2, kind: input, shape index: {}]   ;;  %s641_s3 = inlined_call_operand.vmem [shape: bf16[32,128], index: 3, kind: input, shape index: {}]   ;;  %s642_s4 = inlined_call_operand.vmem [shape: bf16[32,128], index: 4, kind: output, shape index: {}]  }
   0x1   :  { %v454_v0 = vld [vmem:[%s638_s1 + $0x38] sm:$0xff]  ;;  %v453_v2 = vld [vmem:[%s638_s1 + $0x30] sm:$0xff]  ;;  %v464_v4 = vld [vmem:[%s638_s1 + $0x88] sm:$0xff]  ;;  %494 = vset.pattern.permute.xlu0 %v496_v5  ;;  %495 = vset.pattern.permute.xlu1 %v496_v5 }
   0x2   :  { %v462_v1 = vld [vmem:[%s638_s1 + $0x78] sm:$0xff]  ;;  %219 = vmatpush.bf16.msra.mxu0 %v454_v0  ;;  %v461_v3 = vld [vmem:[%s638_s1 + $0x70] sm:$0xff]  ;;  %485 = vmatpush.bf16.msra.mxu3 %v454_v0  ;;  %v463_v6 = vld [vmem:[%s638_s1 + $0x80] sm:$0xff] }
   0x3   :  { %238 = vmatpush.bf16.msra.mxu1 %v462_v1  ;;  %263 = vmatpush.bf16.msra.mxu2 %v464_v4  ;;  %v353_v7 = vld [vmem:[%s639_s0 + $0x8] sm:$0xf]  ;;  %v443_v8 = vld [vmem:[%s639_s0 + $0x10] sm:$0xf0]  ;;  %v291_v12 = vld [vmem:[%s640_s2] sm:$0xff] }
   0x4   :  { %v452_v9 = vld [vmem:[%s638_s1 + $0x28] sm:$0xff]  ;;  %v354_v11 = vor.u32 %v443_v8, %v353_v7  ;;  %v451_v13 = vld [vmem:[%s638_s1 + $0x20] sm:$0xff]  ;;  %297 = vperm.xlu0 %494, %v291_v12   ;;  %v450_v15 = vld [vmem:[%s638_s1 + $0x18] sm:$0xff] }
   0x5   :  { %v460_v10 = vld [vmem:[%s638_s1 + $0x68] sm:$0xff]  ;;  %v459_v14 = vld [vmem:[%s638_s1 + $0x60] sm:$0xff]  ;;  %v458_v16 = vld [vmem:[%s638_s1 + $0x58] sm:$0xff] }
   0x6   :  { %220 = vmatpush.bf16.msra.mxu0 %v453_v2  ;;  %486 = vmatpush.bf16.msra.mxu3 %v453_v2  ;;  %v293_v17 = vld [vmem:[%s640_s2 + $0x10] sm:$0xff]  ;;  %v292_v18 = vld [vmem:[%s640_s2 + $0x8] sm:$0xff]  ;;  %v365_v21 = vld [vmem:[%s639_s0 + $0x20] sm:$0xf] }
   0x7   :  { %239 = vmatpush.bf16.msra.mxu1 %v461_v3  ;;  %264 = vmatpush.bf16.msra.mxu2 %v463_v6  ;;  %v449_v19 = vld [vmem:[%s638_s1 + $0x10] sm:$0xff]  ;;  %v446_v22 = vld [vmem:[%s639_s0 + $0x28] sm:$0xf0]  ;;  %v447_v26 = vld [vmem:[%s638_s1] sm:$0xff] }
   0x8   :  { %v457_v20 = vld [vmem:[%s638_s1 + $0x50] sm:$0xff]  ;;  %307 = vperm.xlu1 %495, %v293_v17   ;;  %v448_v23 = vld [vmem:[%s638_s1 + $0x8] sm:$0xff]  ;;  %v366_v25 = vor.u32 %v446_v22, %v365_v21  ;;  %v455_v27 = vld [vmem:[%s638_s1 + $0x40] sm:$0xff] }
   0x9   :  { %v456_v24 = vld [vmem:[%s638_s1 + $0x48] sm:$0xff]  ;;  %v345_v28 = vld [vmem:[%s639_s0] sm:$0xf]  ;;  %v294_v29 = vld [vmem:[%s640_s2 + $0x18] sm:$0xff] }
   0xa   :  { %221 = vmatpush.bf16.msra.mxu0 %v452_v9  ;;  %487 = vmatpush.bf16.msra.mxu3 %v452_v9  ;;  %v442_v30 = vld [vmem:[%s639_s0 + $0x8] sm:$0xf0]  ;;  %v441_v31 = vld [vmem:[%s639_s0 + $0x4] sm:$0xf]  ;;  %v347_v32 = vld [vmem:[%s639_s0 + $0xc] sm:$0xf0] }
   0xb   :  { %240 = vmatpush.bf16.msra.mxu1 %v460_v10  ;;  %439 = vmatmul.msk.bf16.vlgmr.msra.gmra.mxu2 %vm212_vm0, %v354_v11  ;;  %v357_v33 = vld [vmem:[%s639_s0 + $0x18] sm:$0xf]  ;;  %v445_v34 = vld [vmem:[%s639_s0 + $0x20] sm:$0xf0]  ;;  %v346_v35 = vor.u32 %v442_v30, %v345_v28  ;;  %v350_v36 = vor.u32 %v441_v31, %v347_v32  ;;  %v444_v38 = vld [vmem:[%s639_s0 + $0x1c] sm:$0xf] }
   0xc   :  { %302 = vperm.xlu0 %494, %v292_v18   ;;  %v358_v37 = vor.u32 %v445_v34, %v357_v33  ;;  %v359_v39 = vld [vmem:[%s639_s0 + $0x24] sm:$0xf0]  ;;  %v466_v48 = vld [vmem:[%s641_s3] sm:$0xff]  }
   0xd   :  { %v362_v40 = vor.u32 %v444_v38, %v359_v39  ;;  %v467_v53 = vunpack.c.l.bf16 %v466_v48  ;;  %v468_v55 = vunpack.c.h.bf16 %v466_v48  ;;  %v483_v3 = vld [vmem:[%s641_s3 + $0x8] sm:$0xff]  }
   0xe   :  { %222 = vmatpush.bf16.msra.mxu0 %v451_v13  ;;  %488 = vmatpush.bf16.msra.mxu3 %v451_v13  ;;  %v471_v9 = vunpack.c.l.bf16 %v483_v3  ;;  %v472_v11 = vunpack.c.h.bf16 %v483_v3 }
   0xf   :  { %241 = vmatpush.bf16.msra.mxu1 %v459_v14 }
  0x10   :  { %312 = vperm.xlu1 %495, %v294_v29  }
  0x12   :  { %223 = vmatpush.bf16.msra.mxu0 %v450_v15  ;;  %489 = vmatpush.bf16.msra.mxu3 %v450_v15 }
  0x13   :  { %242 = vmatpush.bf16.msra.mxu1 %v458_v16 }
  0x16   :  { %224 = vmatpush.bf16.msra.mxu0 %v449_v19  ;;  %490 = vmatpush.bf16.msra.mxu3 %v449_v19 }
  0x17   :  { %243 = vmatpush.bf16.msra.mxu1 %v457_v20 }
  0x1a   :  { %225 = vmatpush.bf16.msra.mxu0 %v448_v23  ;;  %491 = vmatpush.bf16.msra.mxu3 %v448_v23 }
  0x1b   :  { %244 = vmatpush.bf16.msra.mxu1 %v456_v24  ;;  %440 = vmatmul.msk.bf16.gmra.mxu2 %vm212_vm0, %v366_v25 }
  0x1e   :  { %226 = vmatpush.bf16.msra.mxu0 %v447_v26  ;;  %492 = vmatpush.bf16.msra.mxu3 %v447_v26 }
  0x1f   :  { %245 = vmatpush.bf16.msra.mxu1 %v455_v27 }
  0x21   :  { %227 = vmatmul.bf16.vlgmr.msra.gmra.mxu0 %v346_v35  ;;  %232 = vmatmul.bf16.vlgmr.msra.gmra.mxu3 %v358_v37 }
  0x22   :  { %246 = vmatmul.bf16.vlgmr.msra.gmra.mxu1 %v350_v36 }
  0x32   :  { %251 = vmatmul.bf16.gmra.mxu1 %v362_v40 }
  0x76   :  { %v298_v42 = vpop.permute.xlu0 %297 }
  0x7a   :  { %v308_v0 = vpop.permute.xlu1 %307 }
  0x7e   :  { %v303_v52 = vpop.permute.xlu0 %302 }
  0x82   :  { %v313_v12 = vpop.permute.xlu1 %312 }
  0x8e   :  { %v266_v41 = vpop.f32.mrf.mxu2 }
  0x96   :  { %v268_v46 = vpop.f32.mrf.mxu2 }
  0x9e   :  { %v228_v43 = vpop.f32.mrf.mxu0  ;;  %v271_v61 = vpop.f32.mrf.mxu2 }
  0x9f   :  { %v247_v44 = vpop.f32.mrf.mxu1 }
  0xa0   :  { %v248_v45 = vadd.f32 %v247_v44, %v228_v43 }
  0xa2   :  { %v267_v47 = vadd.f32 %v266_v41, %v248_v45 }
  0xa4   :  { %v315_v54 = vadd.f32 %v298_v42, %v267_v47  ;;  %v233_v58 = vpop.f32.mrf.mxu3 }
  0xa6   :  { %v230_v49 = vpop.f32.mrf.mxu0  ;;  %v327_v59 = vadd.f32 %v467_v53, %v315_v54  ;;  %v273_v7 = vpop.f32.mrf.mxu2 }
  0xa7   :  { %v249_v50 = vpop.f32.mrf.mxu1 }
  0xa8   :  { %v250_v51 = vadd.f32 %v249_v50, %v230_v49 }
  0xaa   :  { %v269_v56 = vadd.f32 %v268_v46, %v250_v51 }
  0xac   :  { %v316_v57 = vadd.f32 %v303_v52, %v269_v56  ;;  %v235_v4 = vpop.f32.mrf.mxu3 }
  0xae   :  { %v328_v60 = vadd.f32 %v468_v55, %v316_v57 }
  0xaf   :  { %v252_v62 = vpop.f32.mrf.mxu1 }
  0xb0   :  { %v476_v63 = vpack.c.bf16 %v328_v60, %v327_v59  ;;  %v253_v1 = vadd.f32 %v252_v62, %v233_v58 }
  0xb2   :  { %477 = vst [vmem:[%s642_s4] sm:$0xff] %v476_v63   ;;  %v272_v2 = vadd.f32 %v271_v61, %v253_v1 }
  0xb4   :  { %v317_v8 = vadd.f32 %v308_v0, %v272_v2 }
  0xb6   :  { %v329_v14 = vadd.f32 %v471_v9, %v317_v8 }
  0xb7   :  { %v254_v5 = vpop.f32.mrf.mxu1 }
  0xb8   :  { %v255_v6 = vadd.f32 %v254_v5, %v235_v4 }
  0xba   :  { %v274_v10 = vadd.f32 %v273_v7, %v255_v6 }
  0xbc   :  { %v318_v13 = vadd.f32 %v313_v12, %v274_v10 }
  0xbe   :  { %v330_v15 = vadd.f32 %v472_v11, %v318_v13 }
  0xc0   :  { %v481_v16 = vpack.c.bf16 %v330_v15, %v329_v14 }
  0xc2   :  { %484 = vst [vmem:[%s642_s4 + $0x8] sm:$0xff] %v481_v16  }

</bundles_post_ra>
